<compile_context>
chip_gen: v7x
topology: tpu7x:2x2x1
jax: 0.10.0
libtpu: 0.0.40
codegen_flags: <defaults>
</compile_context>

<pallas_src>
import math
import functools

import jax
import jax.numpy as jnp
from jax.experimental import pallas as pl
from jax.experimental.pallas import tpu as pltpu


# ---------------------------------------------------------------------------
# Fused kernel: fc0 -> Clenshaw recurrence (K+1 steps) -> fc1 + log_softmax
# ---------------------------------------------------------------------------
def _chebnn_fused_kernel(ab_ref,                       # SMEM (2, K+1): [alpha_rev; beta]
                         x_ref, a_ref, w_ref, b_ref,   # VMEM
                         o_ref, *, K, F, H, C):
    bf16 = jnp.bfloat16
    f32 = jnp.float32

    # ---- fc0 + relu (dropout = identity at inference) ----------------------
    h0 = jnp.maximum(
        jnp.dot(x_ref[...].astype(bf16), w_ref[0][:F, :H],
                preferred_element_type=f32)
        + b_ref[0][:, :H],
        0.0)                                            # (N, H) f32

    last = jnp.zeros_like(h0)
    second = jnp.zeros_like(h0)

    # ---- Clenshaw recurrence, statically unrolled (K small & static) -------
    for i in range(K + 1):
        alpha = ab_ref[0, i]            # = alpha_params[K - i]  (reversed order)
        beta = ab_ref[1, i]             # = log(lamda / (i + 1) + 1)
        if i == 0:
            # last == second == 0  ->  skip the A_hat matmul entirely.
            tmp = alpha * h0
        elif i == 1:
            # second == 0 still.  A_hat fed straight from VMEM (no vreg pin).
            tmp = (2.0 * jnp.dot(a_ref[...], last.astype(bf16),
                                 preferred_element_type=f32)
                   + alpha * h0)
        else:
            tmp = (2.0 * jnp.dot(a_ref[...], last.astype(bf16),
                                 preferred_element_type=f32)
                   - second + alpha * h0)
        mixed = ((1.0 - beta) * tmp
                 + beta * jnp.dot(tmp.astype(bf16), w_ref[1 + i][:H, :H],
                                  preferred_element_type=f32)
                 + b_ref[1 + i][:, :H])
        if i < K - 1:                   # relu on all but the last two steps
            mixed = jnp.maximum(mixed, 0.0)
        second = last
        last = mixed

    # ---- head: relu + fc1 + log_softmax (dropout = identity) ---------------
    xh = jnp.maximum(last, 0.0)
    # W1 / b1 padded columns are zero, so slice the logits back to C classes
    # before log_softmax.  (Masked (N, C<128) store accepted: sub-us cost.)
    y = (jnp.dot(xh.astype(bf16), w_ref[K + 2][:H, :],
                 preferred_element_type=f32) + b_ref[K + 2])[:, :C]
    m = jnp.max(y, axis=-1, keepdims=True)
    lse = m + jnp.log(jnp.sum(jnp.exp(y - m), axis=-1, keepdims=True))
    o_ref[...] = y - lse


# ---------------------------------------------------------------------------
# One-time parameter packing (done OUTSIDE the per-call forward path)
# ---------------------------------------------------------------------------
def prepare_chebnn_params(params, *, K, lamda):
    """Pack weights/biases/scalars into the slabs the fused kernel consumes."""
    f32 = jnp.float32
    bf16 = jnp.bfloat16
    F, H = params["W0"].shape
    C = params["W1"].shape[1]
    R = max(F, H)            # common row count of the weight slab
    CW = max(H, C)           # common column count of the weight / bias slabs

    # alpha order is INVERSED in the Clenshaw algorithm: step i uses alpha[K-i].
    alpha_rev = params["alpha"][::-1].astype(f32)                        # (K+1,)
    beta = jnp.array([math.log(lamda / (i + 1) + 1.0) for i in range(K + 1)],
                     dtype=f32)                                          # (K+1,)
    ab = jnp.stack([alpha_rev, beta])                                    # (2, K+1)

    def pad2(w, r, c):
        return jnp.pad(w, ((0, r - w.shape[0]), (0, c - w.shape[1])))

    mats = ([pad2(params["W0"], R, CW)]
            + [pad2(w, R, CW) for w in params["conv_w"]]
            + [pad2(params["W1"], R, CW)])
    wslab = jnp.stack(mats).astype(bf16)                                 # (K+3, R, CW)

    biases = ([pad2(params["b0"], 1, CW)]
              + [pad2(b, 1, CW) for b in params["conv_b"]]
              + [pad2(params["b1"], 1, CW)])
    bslab = jnp.stack(biases).astype(f32)                                # (K+3, 1, CW)

    return ab, wslab, bslab


# ---------------------------------------------------------------------------
# Jitted forward (single fused pallas_call, whole problem VMEM-resident)
# ---------------------------------------------------------------------------
@functools.partial(jax.jit, static_argnames=("K", "n_hidden", "n_classes"))
def chebnn_forward(features, a_hat_bf16, ab, wslab, bslab,
                   *, K, n_hidden, n_classes):
    N, F = features.shape
    H, C = n_hidden, n_classes

    kern = functools.partial(_chebnn_fused_kernel, K=K, F=F, H=H, C=C)
    smem = pl.BlockSpec(memory_space=pltpu.MemorySpace.SMEM)
    vmem = pl.BlockSpec(memory_space=pltpu.MemorySpace.VMEM)

    return pl.pallas_call(
        kern,
        out_shape=jax.ShapeDtypeStruct((N, C), jnp.float32),
        in_specs=[
            smem,   # ab      (2, K+1)     f32   alpha_rev / beta
            vmem,   # x       (N, F)       f32   (cast to bf16 at the dot site)
            vmem,   # A_hat   (N, N)       bf16
            vmem,   # wslab   (K+3, R, CW) bf16  W0 | conv_w[0..K] | W1
            vmem,   # bslab   (K+3, 1, CW) f32   b0 | conv_b[0..K] | b1
        ],
        out_specs=vmem,
    )(ab, features, a_hat_bf16, wslab, bslab)


# ---------------------------------------------------------------------------
# Pure-JAX float32 reference (module semantics) for correctness checking
# ---------------------------------------------------------------------------
def chebnn_forward_ref(features, a_hat, params, *, K, lamda):
    x = jnp.maximum(features @ params["W0"] + params["b0"], 0.0)
    h0 = x
    last_h = jnp.zeros_like(h0)
    second_last_h = jnp.zeros_like(h0)
    for i in range(K + 1):
        alpha = params["alpha"][K - i]
        beta = math.log(lamda / (i + 1) + 1.0)
        tmp = 2.0 * (a_hat @ last_h) - second_last_h + alpha * h0
        mixed = (1.0 - beta) * tmp + beta * (tmp @ params["conv_w"][i])
        mixed = mixed + params["conv_b"][i]
        if i < K - 1:
            mixed = jnp.maximum(mixed, 0.0)
        second_last_h = last_h
        last_h = mixed
    x = jnp.maximum(last_h, 0.0)
    y = x @ params["W1"] + params["b1"]
    return jax.nn.log_softmax(y, axis=1)


# ---------------------------------------------------------------------------
# Main
# ---------------------------------------------------------------------------
if __name__ == "__main__":
    N = 128        # nodes
    IN_FEATS = 32
    HIDDEN = 32
    CLASSES = 8
    K = 4
    LAMDA = 0.5

    key = jax.random.PRNGKey(0)
    kA, kX, kW0, kWc, kBc, kW1 = jax.random.split(key, 6)

    # Dense symmetric-normalized adjacency: A_hat = D^-1/2 (A + I) D^-1/2
    adj = (jax.random.uniform(kA, (N, N)) < 0.05).astype(jnp.float32)
    adj = jnp.maximum(adj, adj.T)
    adj = adj + jnp.eye(N, dtype=jnp.float32)
    deg = jnp.sum(adj, axis=1)
    d_inv_sqrt = 1.0 / jnp.sqrt(deg)
    a_hat = adj * d_inv_sqrt[:, None] * d_inv_sqrt[None, :]

    features = jax.random.normal(kX, (N, IN_FEATS), dtype=jnp.float32)

    # Deterministic parameter init (synthetic; shapes match the module).
    wc_keys = jax.random.split(kWc, K + 1)
    params = {
        "W0": jax.random.normal(kW0, (IN_FEATS, HIDDEN), dtype=jnp.float32) * 0.1,
        "b0": jnp.zeros((1, HIDDEN), jnp.float32),
        "conv_w": [jax.random.normal(wc_keys[i], (HIDDEN, HIDDEN), dtype=jnp.float32) * 0.1
                   for i in range(K + 1)],
        "conv_b": [jnp.full((1, HIDDEN), 0.01 * (i + 1), jnp.float32)
                   for i in range(K + 1)],
        "W1": jax.random.normal(kW1, (HIDDEN, CLASSES), dtype=jnp.float32) * 0.1,
        "b1": jnp.zeros((1, CLASSES), jnp.float32),
        # alpha init: t = zeros(K+1); t[0] = 1   (h(lambda) = 1 - lambda)
        "alpha": jnp.zeros((K + 1,), jnp.float32).at[0].set(1.0),
    }

    # One-time prep (hoisted out of the forward path): pack params, cast A_hat.
    ab, wslab, bslab = prepare_chebnn_params(params, K=K, lamda=LAMDA)
    a_hat_bf16 = a_hat.astype(jnp.bfloat16)   # graph is fixed; cast once
    (ab, wslab, bslab, a_hat_bf16) = jax.block_until_ready(
        (ab, wslab, bslab, a_hat_bf16))

    out = chebnn_forward(features, a_hat_bf16, ab, wslab, bslab,
                         K=K, n_hidden=HIDDEN, n_classes=CLASSES)
    out = jax.block_until_ready(out)

    ref = chebnn_forward_ref(features, a_hat, params, K=K, lamda=LAMDA)
    assert out.shape == (N, CLASSES)
    # Tolerance accounts for bf16 MXU inputs (f32 accumulation) vs f32 reference.
    assert jnp.allclose(out, ref, atol=3e-2, rtol=3e-2), \
        "Pallas output mismatch vs reference"

    print("KERNEL_OK")
</pallas_src>

<mosaic_0001>
module attributes {stable_mosaic.version = 11 : i64} {
  func.func @_chebnn_fused_kernel(%arg0: memref<2x5xf32, #tpu.memory_space<smem>>, %arg1: memref<128x32xf32, #tpu.memory_space<vmem>>, %arg2: memref<128x128xbf16, #tpu.memory_space<vmem>>, %arg3: memref<7x32x32xbf16, #tpu.memory_space<vmem>>, %arg4: memref<7x1x32xf32, #tpu.memory_space<vmem>>, %arg5: memref<128x8xf32, #tpu.memory_space<vmem>>) attributes {dimension_semantics = [], scalar_prefetch = 0 : i64, scratch_operands = 0 : i64, tpu.core_type = #tpu.core_type<tc>} {
    %c0 = arith.constant 0 : index
    %c0_0 = arith.constant 0 : index
    %0 = vector.load %arg1[%c0, %c0_0] : memref<128x32xf32, #tpu.memory_space<vmem>>, vector<128x32xf32>
    %1 = arith.truncf %0 : vector<128x32xf32> to vector<128x32xbf16>
    %c0_1 = arith.constant 0 : index
    %c0_2 = arith.constant 0 : index
    %c0_3 = arith.constant 0 : index
    %2 = vector.load %arg3[%c0_1, %c0_2, %c0_3] : memref<7x32x32xbf16, #tpu.memory_space<vmem>>, vector<1x32x32xbf16>
    %3 = vector.shape_cast %2 : vector<1x32x32xbf16> to vector<32x32xbf16>
    %cst = arith.constant dense<0.000000e+00> : vector<128x32xf32>
    %4 = tpu.matmul %1, %3, %cst {dimension_numbers = #tpu.dot_dimension_numbers<[1], [0], [0], [1], [0, 0, 1, 1], [], []>} : vector<128x32xbf16>, vector<32x32xbf16>, vector<128x32xf32> -> vector<128x32xf32>
    %c0_4 = arith.constant 0 : index
    %c0_5 = arith.constant 0 : index
    %c0_6 = arith.constant 0 : index
    %5 = vector.load %arg4[%c0_4, %c0_5, %c0_6] : memref<7x1x32xf32, #tpu.memory_space<vmem>>, vector<1x1x32xf32>
    %6 = vector.shape_cast %5 : vector<1x1x32xf32> to vector<1x32xf32>
    %7 = vector.broadcast %6 : vector<1x32xf32> to vector<128x32xf32>
    %8 = arith.addf %4, %7 : vector<128x32xf32>
    %cst_7 = arith.constant 0.000000e+00 : f32
    %9 = vector.broadcast %cst_7 : f32 to vector<128x32xf32>
    %10 = arith.maximumf %8, %9 : vector<128x32xf32>
    %c0_8 = arith.constant 0 : index
    %c0_9 = arith.constant 0 : index
    %11 = memref.load %arg0[%c0_8, %c0_9] : memref<2x5xf32, #tpu.memory_space<smem>>
    %c1 = arith.constant 1 : index
    %c0_10 = arith.constant 0 : index
    %12 = memref.load %arg0[%c1, %c0_10] : memref<2x5xf32, #tpu.memory_space<smem>>
    %13 = vector.broadcast %11 : f32 to vector<128x32xf32>
    %14 = arith.mulf %13, %10 : vector<128x32xf32>
    %cst_11 = arith.constant 1.000000e+00 : f32
    %15 = arith.subf %cst_11, %12 : f32
    %16 = vector.broadcast %15 : f32 to vector<128x32xf32>
    %17 = arith.mulf %16, %14 : vector<128x32xf32>
    %18 = arith.truncf %14 : vector<128x32xf32> to vector<128x32xbf16>
    %c1_12 = arith.constant 1 : index
    %c0_13 = arith.constant 0 : index
    %c0_14 = arith.constant 0 : index
    %19 = vector.load %arg3[%c1_12, %c0_13, %c0_14] : memref<7x32x32xbf16, #tpu.memory_space<vmem>>, vector<1x32x32xbf16>
    %20 = vector.shape_cast %19 : vector<1x32x32xbf16> to vector<32x32xbf16>
    %cst_15 = arith.constant dense<0.000000e+00> : vector<128x32xf32>
    %21 = tpu.matmul %18, %20, %cst_15 {dimension_numbers = #tpu.dot_dimension_numbers<[1], [0], [0], [1], [0, 0, 1, 1], [], []>} : vector<128x32xbf16>, vector<32x32xbf16>, vector<128x32xf32> -> vector<128x32xf32>
    %22 = vector.broadcast %12 : f32 to vector<128x32xf32>
    %23 = arith.mulf %22, %21 : vector<128x32xf32>
    %24 = arith.addf %17, %23 : vector<128x32xf32>
    %c1_16 = arith.constant 1 : index
    %c0_17 = arith.constant 0 : index
    %c0_18 = arith.constant 0 : index
    %25 = vector.load %arg4[%c1_16, %c0_17, %c0_18] : memref<7x1x32xf32, #tpu.memory_space<vmem>>, vector<1x1x32xf32>
    %26 = vector.shape_cast %25 : vector<1x1x32xf32> to vector<1x32xf32>
    %27 = vector.broadcast %26 : vector<1x32xf32> to vector<128x32xf32>
    %28 = arith.addf %24, %27 : vector<128x32xf32>
    %cst_19 = arith.constant 0.000000e+00 : f32
    %29 = vector.broadcast %cst_19 : f32 to vector<128x32xf32>
    %30 = arith.maximumf %28, %29 : vector<128x32xf32>
    %c0_20 = arith.constant 0 : index
    %c1_21 = arith.constant 1 : index
    %31 = memref.load %arg0[%c0_20, %c1_21] : memref<2x5xf32, #tpu.memory_space<smem>>
    %c1_22 = arith.constant 1 : index
    %c1_23 = arith.constant 1 : index
    %32 = memref.load %arg0[%c1_22, %c1_23] : memref<2x5xf32, #tpu.memory_space<smem>>
    %c0_24 = arith.constant 0 : index
    %c0_25 = arith.constant 0 : index
    %33 = vector.load %arg2[%c0_24, %c0_25] : memref<128x128xbf16, #tpu.memory_space<vmem>>, vector<128x128xbf16>
    %34 = arith.truncf %30 : vector<128x32xf32> to vector<128x32xbf16>
    %cst_26 = arith.constant dense<0.000000e+00> : vector<128x32xf32>
    %35 = tpu.matmul %33, %34, %cst_26 {dimension_numbers = #tpu.dot_dimension_numbers<[1], [0], [0], [1], [0, 0, 1, 1], [], []>} : vector<128x128xbf16>, vector<128x32xbf16>, vector<128x32xf32> -> vector<128x32xf32>
    %cst_27 = arith.constant 2.000000e+00 : f32
    %36 = vector.broadcast %cst_27 : f32 to vector<128x32xf32>
    %37 = arith.mulf %36, %35 : vector<128x32xf32>
    %38 = vector.broadcast %31 : f32 to vector<128x32xf32>
    %39 = arith.mulf %38, %10 : vector<128x32xf32>
    %40 = arith.addf %37, %39 : vector<128x32xf32>
    %cst_28 = arith.constant 1.000000e+00 : f32
    %41 = arith.subf %cst_28, %32 : f32
    %42 = vector.broadcast %41 : f32 to vector<128x32xf32>
    %43 = arith.mulf %42, %40 : vector<128x32xf32>
    %44 = arith.truncf %40 : vector<128x32xf32> to vector<128x32xbf16>
    %c2 = arith.constant 2 : index
    %c0_29 = arith.constant 0 : index
    %c0_30 = arith.constant 0 : index
    %45 = vector.load %arg3[%c2, %c0_29, %c0_30] : memref<7x32x32xbf16, #tpu.memory_space<vmem>>, vector<1x32x32xbf16>
    %46 = vector.shape_cast %45 : vector<1x32x32xbf16> to vector<32x32xbf16>
    %cst_31 = arith.constant dense<0.000000e+00> : vector<128x32xf32>
    %47 = tpu.matmul %44, %46, %cst_31 {dimension_numbers = #tpu.dot_dimension_numbers<[1], [0], [0], [1], [0, 0, 1, 1], [], []>} : vector<128x32xbf16>, vector<32x32xbf16>, vector<128x32xf32> -> vector<128x32xf32>
    %48 = vector.broadcast %32 : f32 to vector<128x32xf32>
    %49 = arith.mulf %48, %47 : vector<128x32xf32>
    %50 = arith.addf %43, %49 : vector<128x32xf32>
    %c2_32 = arith.constant 2 : index
    %c0_33 = arith.constant 0 : index
    %c0_34 = arith.constant 0 : index
    %51 = vector.load %arg4[%c2_32, %c0_33, %c0_34] : memref<7x1x32xf32, #tpu.memory_space<vmem>>, vector<1x1x32xf32>
    %52 = vector.shape_cast %51 : vector<1x1x32xf32> to vector<1x32xf32>
    %53 = vector.broadcast %52 : vector<1x32xf32> to vector<128x32xf32>
    %54 = arith.addf %50, %53 : vector<128x32xf32>
    %cst_35 = arith.constant 0.000000e+00 : f32
    %55 = vector.broadcast %cst_35 : f32 to vector<128x32xf32>
    %56 = arith.maximumf %54, %55 : vector<128x32xf32>
    %c0_36 = arith.constant 0 : index
    %c2_37 = arith.constant 2 : index
    %57 = memref.load %arg0[%c0_36, %c2_37] : memref<2x5xf32, #tpu.memory_space<smem>>
    %c1_38 = arith.constant 1 : index
    %c2_39 = arith.constant 2 : index
    %58 = memref.load %arg0[%c1_38, %c2_39] : memref<2x5xf32, #tpu.memory_space<smem>>
    %c0_40 = arith.constant 0 : index
    %c0_41 = arith.constant 0 : index
    %59 = vector.load %arg2[%c0_40, %c0_41] : memref<128x128xbf16, #tpu.memory_space<vmem>>, vector<128x128xbf16>
    %60 = arith.truncf %56 : vector<128x32xf32> to vector<128x32xbf16>
    %cst_42 = arith.constant dense<0.000000e+00> : vector<128x32xf32>
    %61 = tpu.matmul %59, %60, %cst_42 {dimension_numbers = #tpu.dot_dimension_numbers<[1], [0], [0], [1], [0, 0, 1, 1], [], []>} : vector<128x128xbf16>, vector<128x32xbf16>, vector<128x32xf32> -> vector<128x32xf32>
    %cst_43 = arith.constant 2.000000e+00 : f32
    %62 = vector.broadcast %cst_43 : f32 to vector<128x32xf32>
    %63 = arith.mulf %62, %61 : vector<128x32xf32>
    %64 = arith.subf %63, %30 : vector<128x32xf32>
    %65 = vector.broadcast %57 : f32 to vector<128x32xf32>
    %66 = arith.mulf %65, %10 : vector<128x32xf32>
    %67 = arith.addf %64, %66 : vector<128x32xf32>
    %cst_44 = arith.constant 1.000000e+00 : f32
    %68 = arith.subf %cst_44, %58 : f32
    %69 = vector.broadcast %68 : f32 to vector<128x32xf32>
    %70 = arith.mulf %69, %67 : vector<128x32xf32>
    %71 = arith.truncf %67 : vector<128x32xf32> to vector<128x32xbf16>
    %c3 = arith.constant 3 : index
    %c0_45 = arith.constant 0 : index
    %c0_46 = arith.constant 0 : index
    %72 = vector.load %arg3[%c3, %c0_45, %c0_46] : memref<7x32x32xbf16, #tpu.memory_space<vmem>>, vector<1x32x32xbf16>
    %73 = vector.shape_cast %72 : vector<1x32x32xbf16> to vector<32x32xbf16>
    %cst_47 = arith.constant dense<0.000000e+00> : vector<128x32xf32>
    %74 = tpu.matmul %71, %73, %cst_47 {dimension_numbers = #tpu.dot_dimension_numbers<[1], [0], [0], [1], [0, 0, 1, 1], [], []>} : vector<128x32xbf16>, vector<32x32xbf16>, vector<128x32xf32> -> vector<128x32xf32>
    %75 = vector.broadcast %58 : f32 to vector<128x32xf32>
    %76 = arith.mulf %75, %74 : vector<128x32xf32>
    %77 = arith.addf %70, %76 : vector<128x32xf32>
    %c3_48 = arith.constant 3 : index
    %c0_49 = arith.constant 0 : index
    %c0_50 = arith.constant 0 : index
    %78 = vector.load %arg4[%c3_48, %c0_49, %c0_50] : memref<7x1x32xf32, #tpu.memory_space<vmem>>, vector<1x1x32xf32>
    %79 = vector.shape_cast %78 : vector<1x1x32xf32> to vector<1x32xf32>
    %80 = vector.broadcast %79 : vector<1x32xf32> to vector<128x32xf32>
    %81 = arith.addf %77, %80 : vector<128x32xf32>
    %cst_51 = arith.constant 0.000000e+00 : f32
    %82 = vector.broadcast %cst_51 : f32 to vector<128x32xf32>
    %83 = arith.maximumf %81, %82 : vector<128x32xf32>
    %c0_52 = arith.constant 0 : index
    %c3_53 = arith.constant 3 : index
    %84 = memref.load %arg0[%c0_52, %c3_53] : memref<2x5xf32, #tpu.memory_space<smem>>
    %c1_54 = arith.constant 1 : index
    %c3_55 = arith.constant 3 : index
    %85 = memref.load %arg0[%c1_54, %c3_55] : memref<2x5xf32, #tpu.memory_space<smem>>
    %c0_56 = arith.constant 0 : index
    %c0_57 = arith.constant 0 : index
    %86 = vector.load %arg2[%c0_56, %c0_57] : memref<128x128xbf16, #tpu.memory_space<vmem>>, vector<128x128xbf16>
    %87 = arith.truncf %83 : vector<128x32xf32> to vector<128x32xbf16>
    %cst_58 = arith.constant dense<0.000000e+00> : vector<128x32xf32>
    %88 = tpu.matmul %86, %87, %cst_58 {dimension_numbers = #tpu.dot_dimension_numbers<[1], [0], [0], [1], [0, 0, 1, 1], [], []>} : vector<128x128xbf16>, vector<128x32xbf16>, vector<128x32xf32> -> vector<128x32xf32>
    %cst_59 = arith.constant 2.000000e+00 : f32
    %89 = vector.broadcast %cst_59 : f32 to vector<128x32xf32>
    %90 = arith.mulf %89, %88 : vector<128x32xf32>
    %91 = arith.subf %90, %56 : vector<128x32xf32>
    %92 = vector.broadcast %84 : f32 to vector<128x32xf32>
    %93 = arith.mulf %92, %10 : vector<128x32xf32>
    %94 = arith.addf %91, %93 : vector<128x32xf32>
    %cst_60 = arith.constant 1.000000e+00 : f32
    %95 = arith.subf %cst_60, %85 : f32
    %96 = vector.broadcast %95 : f32 to vector<128x32xf32>
    %97 = arith.mulf %96, %94 : vector<128x32xf32>
    %98 = arith.truncf %94 : vector<128x32xf32> to vector<128x32xbf16>
    %c4 = arith.constant 4 : index
    %c0_61 = arith.constant 0 : index
    %c0_62 = arith.constant 0 : index
    %99 = vector.load %arg3[%c4, %c0_61, %c0_62] : memref<7x32x32xbf16, #tpu.memory_space<vmem>>, vector<1x32x32xbf16>
    %100 = vector.shape_cast %99 : vector<1x32x32xbf16> to vector<32x32xbf16>
    %cst_63 = arith.constant dense<0.000000e+00> : vector<128x32xf32>
    %101 = tpu.matmul %98, %100, %cst_63 {dimension_numbers = #tpu.dot_dimension_numbers<[1], [0], [0], [1], [0, 0, 1, 1], [], []>} : vector<128x32xbf16>, vector<32x32xbf16>, vector<128x32xf32> -> vector<128x32xf32>
    %102 = vector.broadcast %85 : f32 to vector<128x32xf32>
    %103 = arith.mulf %102, %101 : vector<128x32xf32>
    %104 = arith.addf %97, %103 : vector<128x32xf32>
    %c4_64 = arith.constant 4 : index
    %c0_65 = arith.constant 0 : index
    %c0_66 = arith.constant 0 : index
    %105 = vector.load %arg4[%c4_64, %c0_65, %c0_66] : memref<7x1x32xf32, #tpu.memory_space<vmem>>, vector<1x1x32xf32>
    %106 = vector.shape_cast %105 : vector<1x1x32xf32> to vector<1x32xf32>
    %107 = vector.broadcast %106 : vector<1x32xf32> to vector<128x32xf32>
    %108 = arith.addf %104, %107 : vector<128x32xf32>
    %c0_67 = arith.constant 0 : index
    %c4_68 = arith.constant 4 : index
    %109 = memref.load %arg0[%c0_67, %c4_68] : memref<2x5xf32, #tpu.memory_space<smem>>
    %c1_69 = arith.constant 1 : index
    %c4_70 = arith.constant 4 : index
    %110 = memref.load %arg0[%c1_69, %c4_70] : memref<2x5xf32, #tpu.memory_space<smem>>
    %c0_71 = arith.constant 0 : index
    %c0_72 = arith.constant 0 : index
    %111 = vector.load %arg2[%c0_71, %c0_72] : memref<128x128xbf16, #tpu.memory_space<vmem>>, vector<128x128xbf16>
    %112 = arith.truncf %108 : vector<128x32xf32> to vector<128x32xbf16>
    %cst_73 = arith.constant dense<0.000000e+00> : vector<128x32xf32>
    %113 = tpu.matmul %111, %112, %cst_73 {dimension_numbers = #tpu.dot_dimension_numbers<[1], [0], [0], [1], [0, 0, 1, 1], [], []>} : vector<128x128xbf16>, vector<128x32xbf16>, vector<128x32xf32> -> vector<128x32xf32>
    %cst_74 = arith.constant 2.000000e+00 : f32
    %114 = vector.broadcast %cst_74 : f32 to vector<128x32xf32>
    %115 = arith.mulf %114, %113 : vector<128x32xf32>
    %116 = arith.subf %115, %83 : vector<128x32xf32>
    %117 = vector.broadcast %109 : f32 to vector<128x32xf32>
    %118 = arith.mulf %117, %10 : vector<128x32xf32>
    %119 = arith.addf %116, %118 : vector<128x32xf32>
    %cst_75 = arith.constant 1.000000e+00 : f32
    %120 = arith.subf %cst_75, %110 : f32
    %121 = vector.broadcast %120 : f32 to vector<128x32xf32>
    %122 = arith.mulf %121, %119 : vector<128x32xf32>
    %123 = arith.truncf %119 : vector<128x32xf32> to vector<128x32xbf16>
    %c5 = arith.constant 5 : index
    %c0_76 = arith.constant 0 : index
    %c0_77 = arith.constant 0 : index
    %124 = vector.load %arg3[%c5, %c0_76, %c0_77] : memref<7x32x32xbf16, #tpu.memory_space<vmem>>, vector<1x32x32xbf16>
    %125 = vector.shape_cast %124 : vector<1x32x32xbf16> to vector<32x32xbf16>
    %cst_78 = arith.constant dense<0.000000e+00> : vector<128x32xf32>
    %126 = tpu.matmul %123, %125, %cst_78 {dimension_numbers = #tpu.dot_dimension_numbers<[1], [0], [0], [1], [0, 0, 1, 1], [], []>} : vector<128x32xbf16>, vector<32x32xbf16>, vector<128x32xf32> -> vector<128x32xf32>
    %127 = vector.broadcast %110 : f32 to vector<128x32xf32>
    %128 = arith.mulf %127, %126 : vector<128x32xf32>
    %129 = arith.addf %122, %128 : vector<128x32xf32>
    %c5_79 = arith.constant 5 : index
    %c0_80 = arith.constant 0 : index
    %c0_81 = arith.constant 0 : index
    %130 = vector.load %arg4[%c5_79, %c0_80, %c0_81] : memref<7x1x32xf32, #tpu.memory_space<vmem>>, vector<1x1x32xf32>
    %131 = vector.shape_cast %130 : vector<1x1x32xf32> to vector<1x32xf32>
    %132 = vector.broadcast %131 : vector<1x32xf32> to vector<128x32xf32>
    %133 = arith.addf %129, %132 : vector<128x32xf32>
    %cst_82 = arith.constant 0.000000e+00 : f32
    %134 = vector.broadcast %cst_82 : f32 to vector<128x32xf32>
    %135 = arith.maximumf %133, %134 : vector<128x32xf32>
    %136 = arith.truncf %135 : vector<128x32xf32> to vector<128x32xbf16>
    %c6 = arith.constant 6 : index
    %c0_83 = arith.constant 0 : index
    %c0_84 = arith.constant 0 : index
    %137 = vector.load %arg3[%c6, %c0_83, %c0_84] : memref<7x32x32xbf16, #tpu.memory_space<vmem>>, vector<1x32x32xbf16>
    %138 = vector.shape_cast %137 : vector<1x32x32xbf16> to vector<32x32xbf16>
    %cst_85 = arith.constant dense<0.000000e+00> : vector<128x32xf32>
    %139 = tpu.matmul %136, %138, %cst_85 {dimension_numbers = #tpu.dot_dimension_numbers<[1], [0], [0], [1], [0, 0, 1, 1], [], []>} : vector<128x32xbf16>, vector<32x32xbf16>, vector<128x32xf32> -> vector<128x32xf32>
    %c6_86 = arith.constant 6 : index
    %c0_87 = arith.constant 0 : index
    %c0_88 = arith.constant 0 : index
    %140 = vector.load %arg4[%c6_86, %c0_87, %c0_88] : memref<7x1x32xf32, #tpu.memory_space<vmem>>, vector<1x1x32xf32>
    %141 = vector.shape_cast %140 : vector<1x1x32xf32> to vector<1x32xf32>
    %142 = vector.broadcast %141 : vector<1x32xf32> to vector<128x32xf32>
    %143 = arith.addf %139, %142 : vector<128x32xf32>
    %144 = vector.extract_strided_slice %143 {offsets = [0, 0], sizes = [128, 8], strides = [1, 1]} : vector<128x32xf32> to vector<128x8xf32>
    %cst_89 = arith.constant dense<0xFF800000> : vector<128xf32>
    %145 = vector.multi_reduction <maximumf>, %144, %cst_89 [1] : vector<128x8xf32> to vector<128xf32>
    %146 = vector.shape_cast %145 : vector<128xf32> to vector<128x1xf32>
    %147 = vector.broadcast %146 : vector<128x1xf32> to vector<128x8xf32>
    %148 = arith.subf %144, %147 : vector<128x8xf32>
    %149 = math.exp %148 : vector<128x8xf32>
    %cst_90 = arith.constant dense<0.000000e+00> : vector<128xf32>
    %150 = vector.multi_reduction <add>, %149, %cst_90 [1] : vector<128x8xf32> to vector<128xf32>
    %151 = vector.shape_cast %150 : vector<128xf32> to vector<128x1xf32>
    %152 = math.log %151 : vector<128x1xf32>
    %153 = arith.addf %146, %152 : vector<128x1xf32>
    %154 = vector.broadcast %153 : vector<128x1xf32> to vector<128x8xf32>
    %155 = arith.subf %144, %154 : vector<128x8xf32>
    %c0_91 = arith.constant 0 : index
    %c0_92 = arith.constant 0 : index
    %156 = vector.load %arg5[%c0_91, %c0_92] : memref<128x8xf32, #tpu.memory_space<vmem>>, vector<128x8xf32>
    tpu.vector_store %arg5[%c0_91, %c0_92], %155 {strides = array<i32>} : memref<128x8xf32, #tpu.memory_space<vmem>>, vector<128x8xf32>,
    return
  }
}

</mosaic_0001>

<bundles_post_ra>
// kernel: chebnn_forward.1
= control target key start
LH: loop header
LB: loop body
LE: loop exit
PB: predicated region body
PF: predicated region fallthrough
CT: control target
= control target key end

     0   :  { %10 = vsyncpa [#allocation4], 0  ;;  %s4828_s0 = inlined_call_operand.vmem [shape: f32[2,5], index: 0, kind: input, shape index: {}]   ;;  %s4829_s1 = inlined_call_operand.vmem [shape: f32[128,32], index: 1, kind: input, shape index: {}]   ;;  %s4830_s2 = inlined_call_operand.hbm [shape: bf16[128,128], index: 2, kind: input, shape index: {}]   ;;  %s4831_s3 = inlined_call_operand.vmem [shape: bf16[7,32,32], index: 3, kind: input, shape index: {}]   ;;  %s4832_s4 = inlined_call_operand.vmem [shape: f32[7,1,32], index: 4, kind: input, shape index: {}]   ;;  %s4833_s5 = inlined_call_operand.vmem [shape: f32[128,8], index: 5, kind: output, shape index: {}]  }
   0x1   :  { %s18_s20 = sshll.u32 %s4828_s0, 4  ;;  %s19_s20 = int_to_ptr.vmem [resolvable:$true] %s18_s20 }
   0x2   :  { %11 = vsyncpa [#allocation3], 0  ;;  %s3182_s21 = scalar_lea.vmem %s19_s20, 32  ;;  %p3187_p1 = scmp.lt.s32.totalorder %s19_s20, %s19_s20 }
   0x3   :  { %p3183_p0 = scmp.ne.s32.totalorder %s19_s20, %s3182_s21  ;;  %p3188_p2 = scmp.lt.s32.totalorder %s3182_s21, %s3182_s21 }
   0x5   :  { %p3189_p3 = por %p3188_p2, %p3187_p1 }
   0x7   :  { %p3190_p4 = pnand %p3189_p3, %p3183_p0 }
   0x9   :  { %3193 = shalt.err (!%p3190_p4)
}
   0xa   :  { %s3220_s22 = smov [#allocation2]   ;;  %s3221_s23 = smov [#allocation5]  }
   0xb   :  { %21 = dma.vmem_to_smem %s19_s20, 32, %s3220_s22, [#allocation4]  }
   0xc   :  { %s29_s24 = sshll.u32 %s3221_s23, 4  ;;  %s3194_s27 = scalar_lea.hbm %s4830_s2, 1024  ;;  %s30_s24 = int_to_ptr.vmem [resolvable:$true] %s29_s24 }
   0xd   :  { %p3195_p5 = scmp.ne.s32.totalorder %s4830_s2, %s3194_s27  ;;  %p3198_p6 = scmp.lt.u32.totalorder %s3194_s27, %s4830_s2 }
   0xf   :  { %p3200_p7 = pnand %p3198_p6, %p3195_p5 }
  0x11   :  { %3203 = shalt.err (!%p3200_p7)
}
  0x12   :  { %s3204_s6 = scalar_lea.vmem %s30_s24, 1024  ;;  %p3209_p9 = scmp.lt.s32.totalorder %s30_s24, %s30_s24 }
  0x13   :  { %p3205_p8 = scmp.ne.s32.totalorder %s30_s24, %s3204_s6  ;;  %p3210_p10 = scmp.lt.s32.totalorder %s3204_s6, %s3204_s6 }
  0x15   :  { %p3211_p11 = por %p3210_p10, %p3209_p9 }
  0x17   :  { %p3212_p12 = pnand %p3211_p11, %p3205_p8 }
  0x19   :  { %3215 = shalt.err (!%p3212_p12)
}
  0x1a   :  { %s3222_s7 = smov 64   ;;  %s3223_s8 = smov 4  }
  0x1b   :  { %35 = dma.hbm_to_vmem [thread:$0]  %s4830_s2, 1024, %s30_s24, [#allocation3], %s3222_s7, %s3222_s7, %s3223_s8  }
  0x1c   :  { %3216 = dma.done.wait [#allocation4], 32  }
  0x1d   :  { %3217 = vsyncadd [#allocation4], 4294967264 }
  0x1e   :  { %3218 = dma.done.wait [#allocation3], 1024  }
  0x1f   :  { %3219 = vsyncadd [#allocation3], 4294966272 }
  0x20   :  { %46 = sfence }
  0x21   :  { %v3088_v0 = vld [vmem:[%s4831_s3] sm:$0xff]   ;;  %v3089_v1 = vld [vmem:[%s4831_s3 + $0x8] sm:$0xff]   ;;  %vm95_vm0 = vcmask 261120   ;;  %v50_v5 = vld [vmem:[%s4829_s1 + $0x10] sm:$0xff]  ;;  %s233_s23 = sld [smem:[#allocation2]]  ;;  %s2570_s7 = sld [smem:[#allocation2 + $0x1]] }
  0x22   :  { %2800 = vmatprep.subr.bf16.mxu0 %v3088_v0  ;;  %v48_v2 = vld [vmem:[%s4829_s1] sm:$0xff]  ;;  %v49_v3 = vld [vmem:[%s4829_s1 + $0x8] sm:$0xff]  ;;  %v51_v6 = vld [vmem:[%s4829_s1 + $0x18] sm:$0xff]  ;;  %s2553_s0 = sld [smem:[#allocation2 + $0x80]]  ;;  %s2571_s12 = sld [smem:[#allocation2 + $0x81]]  ;;  %vm2311_vm1 = vcmask 64512  }
  0x23   :  { %2801 = vmatpush3.bf16.msra.mxu0 %v3088_v0  ;;  %v64_v4 = vpack.c.bf16 %v49_v3, %v48_v2  ;;  %v52_v7 = vld [vmem:[%s4829_s1 + $0x20] sm:$0xff]  ;;  %v53_v8 = vld [vmem:[%s4829_s1 + $0x28] sm:$0xff]  ;;  %v65_v9 = vpack.c.bf16 %v51_v6, %v50_v5  ;;  %v54_v11 = vld [vmem:[%s4829_s1 + $0x30] sm:$0xff]  ;;  %s2596_s16 = sld [smem:[#allocation2 + $0x2]]  ;;  %s2614_s24 = sld [smem:[#allocation2 + $0x3]] }
  0x24   :  { %2802 = vmatprep.subr.bf16.mxu0 %v3089_v1  ;;  %v66_v10 = vpack.c.bf16 %v53_v8, %v52_v7  ;;  %v55_v12 = vld [vmem:[%s4829_s1 + $0x38] sm:$0xff]  ;;  %v56_v13 = vld [vmem:[%s4829_s1 + $0x40] sm:$0xff]  ;;  %v57_v14 = vld [vmem:[%s4829_s1 + $0x48] sm:$0xff]  ;;  %s2597_s20 = sld [smem:[#allocation2 + $0x82]]  ;;  %s2615_s25 = sld [smem:[#allocation2 + $0x83]] }
  0x25   :  { %2804 = vmatprep.mubr.msk.bf16.mxu0 %vm95_vm0, %v64_v4  ;;  %v67_v15 = vpack.c.bf16 %v55_v12, %v54_v11  ;;  %v68_v16 = vpack.c.bf16 %v57_v14, %v56_v13  ;;  %v58_v17 = vld [vmem:[%s4829_s1 + $0x50] sm:$0xff]  ;;  %v59_v18 = vld [vmem:[%s4829_s1 + $0x58] sm:$0xff]  ;;  %v60_v19 = vld [vmem:[%s4829_s1 + $0x60] sm:$0xff]  ;;  %s2632_s8 = sld [smem:[#allocation2 + $0x4]] }
  0x26   :  { %v61_v20 = vld [vmem:[%s4829_s1 + $0x68] sm:$0xff]  ;;  %v69_v21 = vpack.c.bf16 %v59_v18, %v58_v17  ;;  %v62_v23 = vld [vmem:[%s4829_s1 + $0x70] sm:$0xff]  ;;  %v63_v24 = vld [vmem:[%s4829_s1 + $0x78] sm:$0xff]  ;;  %s2633_s11 = sld [smem:[#allocation2 + $0x84]] }
  0x27   :  { %2803 = vmatpush3.bf16.msra.mxu0 %v3089_v1  ;;  %v70_v22 = vpack.c.bf16 %v61_v20, %v60_v19  ;;  %v71_v25 = vpack.c.bf16 %v63_v24, %v62_v23  ;;  %v3090_v26 = vld [vmem:[%s4831_s3 + $0x10] sm:$0xff]   ;;  %v3091_v27 = vld [vmem:[%s4831_s3 + $0x18] sm:$0xff]   ;;  %v3340_v28 = vld [vmem:[%s4832_s4] ss:$0 sm:$0xff]  ;;  %v3350_v39 = vstv %s233_s23 }
  0x28   :  { %2820 = vmatprep.subr.bf16.mxu1 %v3090_v26  ;;  %s252_s29 = ssub.f32 1.0, %s2553_s0 }
  0x29   :  { %2821 = vmatpush3.bf16.msra.mxu1 %v3090_v26  ;;  %s709_s13 = ssub.f32 1.0, %s2571_s12 }
  0x2a   :  { %2805 = vmatmul.mubr.msk.bf16.vlgmr.msra.gmra.mrb[0].mxu0 %vm95_vm0, %v65_v9  ;;  %2822 = vmatprep.subr.bf16.mxu1 %v3091_v27  ;;  %s1118_s21 = ssub.f32 1.0, %s2597_s20 }
  0x2b   :  { %2808 = vmatprep.mubr.msk.bf16.mxu0 %vm95_vm0, %v66_v10  ;;  %s1527_s1 = ssub.f32 1.0, %s2615_s25 }
  0x2d   :  { %2823 = vmatpush3.bf16.msra.mxu1 %v3091_v27 }
  0x32   :  { %2809 = vmatmul.mubr.msk.bf16.gmra.mrb[4].mxu0 %vm95_vm0, %v67_v15 }
  0x33   :  { %2812 = vmatprep.mubr.msk.bf16.mxu0 %vm95_vm0, %v68_v16 }
  0x3a   :  { %2813 = vmatmul.mubr.msk.bf16.gmra.mrb[8].mxu0 %vm95_vm0, %v69_v21 }
  0x3b   :  { %2816 = vmatprep.mubr.msk.bf16.mxu0 %vm95_vm0, %v70_v22 }
  0x42   :  { %2817 = vmatmul.mubr.msk.bf16.gmra.mrb[12].mxu0 %vm95_vm0, %v71_v25 }
  0xfd   :  { %v2806_v29 = vpop.f32.mrb[0].mxu0 }
  0xfe   :  { %v163_v30 = vadd.f32 %v2806_v29, %v3340_v28  ;;  %v154_v31 = vpop.f32.mrb[1].mxu0 }
  0xff   :  { %v155_v32 = vadd.f32 %v3340_v28, %v154_v31  ;;  %v2807_v33 = vpop.f32.mrb[2].mxu0 }
 0x100   :  { %v3344_v34 = vmax.f32 %v163_v30, 0.0  ;;  %v166_v35 = vadd.f32 %v2807_v33, %v3340_v28  ;;  %v157_v36 = vpop.f32.mrb[3].mxu0 }
 0x101   :  { %v3347_v37 = vmax.f32 %v155_v32, 0.0  ;;  %v158_v38 = vadd.f32 %v3340_v28, %v157_v36 }
 0x102   :  { %v3352_v40 = vmax.f32 %v166_v35, 0.0  ;;  %v3358_v42 = vmul.f32 %v3350_v39, %v3344_v34 }
 0x103   :  { %v3354_v41 = vmax.f32 %v158_v38, 0.0  ;;  %v3366_v45 = vmul.f32 %v3350_v39, %v3347_v37 }
 0x104   :  { %v3362_v43 = vmul.f32 %v3350_v39, %v3352_v40 }
 0x105   :  { %v2810_v44 = vpop.f32.mrb[4].mxu0  ;;  %v3370_v46 = vmul.f32 %v3350_v39, %v3354_v41 }
 0x106   :  { %v179_v47 = vadd.f32 %v2810_v44, %v3340_v28  ;;  %v170_v48 = vpop.f32.mrb[5].mxu0  ;;  %v271_v49 = vpack.c.bf16 %v3362_v43, %v3358_v42 }
 0x107   :  { %v171_v50 = vadd.f32 %v3340_v28, %v170_v48  ;;  %v2811_v51 = vpop.f32.mrb[6].mxu0  ;;  %v270_v52 = vpack.c.bf16 %v3370_v46, %v3366_v45  ;;  %v3100_v48 = vld [vmem:[%s4831_s3 + $0x20] sm:$0xff]  }
 0x108   :  { %v3378_v53 = vmax.f32 %v179_v47, 0.0  ;;  %v182_v54 = vadd.f32 %v2811_v51, %v3340_v28  ;;  %v173_v55 = vpop.f32.mrb[7].mxu0  ;;  %v3480_v47 = vld [vmem:[#allocation5] sm:$0xff]   ;;  %2872 = vmatprep.subr.bf16.mxu1 %v3100_v48 }
 0x109   :  { %v3381_v56 = vmax.f32 %v171_v50, 0.0  ;;  %v174_v57 = vadd.f32 %v3340_v28, %v173_v55  ;;  %2824 = vmatprep.mubr.msk.bf16.mxu1 %vm95_vm0, %v270_v52  ;;  %2856 = vmatprep.mubr.bf16.mxu0 %v3480_v47  ;;  %v3491_v50 = vstv %s2553_s0 }
 0x10a   :  { %v3385_v58 = vmax.f32 %v182_v54, 0.0  ;;  %2825 = vmatmul.mubr.msk.bf16.vlgmr.msra.gmra.mrb[0].mxu1 %vm95_vm0, %v271_v49  ;;  %v3392_v60 = vmul.f32 %v3350_v39, %v3378_v53  ;;  %v3489_v49 = vstv %s252_s29 }
 0x10b   :  { %v3388_v59 = vmax.f32 %v174_v57, 0.0  ;;  %v3400_v63 = vmul.f32 %v3350_v39, %v3381_v56  ;;  %2873 = vmatpush3.bf16.msra.mxu1 %v3100_v48  ;;  %v256_v52 = vmul.f32 %v3489_v49, %v3358_v42  ;;  %v254_v57 = vmul.f32 %v3489_v49, %v3366_v45 }
 0x10c   :  { %v3396_v61 = vmul.f32 %v3350_v39, %v3385_v58 }
 0x10d   :  { %v2814_v62 = vpop.f32.mrb[8].mxu0  ;;  %v3404_v0 = vmul.f32 %v3350_v39, %v3388_v59 }
 0x10e   :  { %v195_v1 = vadd.f32 %v2814_v62, %v3340_v28  ;;  %v186_v2 = vpop.f32.mrb[9].mxu0  ;;  %v273_v3 = vpack.c.bf16 %v3396_v61, %v3392_v60 }
 0x10f   :  { %v187_v4 = vadd.f32 %v3340_v28, %v186_v2  ;;  %v2815_v5 = vpop.f32.mrb[10].mxu0  ;;  %v272_v6 = vpack.c.bf16 %v3404_v0, %v3400_v63 }
 0x110   :  { %v3412_v7 = vmax.f32 %v195_v1, 0.0  ;;  %v198_v8 = vadd.f32 %v2815_v5, %v3340_v28  ;;  %v189_v9 = vpop.f32.mrb[11].mxu0 }
 0x111   :  { %v3415_v10 = vmax.f32 %v187_v4, 0.0  ;;  %v190_v11 = vadd.f32 %v3340_v28, %v189_v9  ;;  %2828 = vmatprep.mubr.msk.bf16.mxu1 %vm95_vm0, %v272_v6  ;;  %v257_v4 = vmul.f32 %v3489_v49, %v3362_v43 }
 0x112   :  { %v3419_v12 = vmax.f32 %v198_v8, 0.0  ;;  %2829 = vmatmul.mubr.msk.bf16.gmra.mrb[4].mxu1 %vm95_vm0, %v273_v3  ;;  %v3426_v14 = vmul.f32 %v3350_v39, %v3412_v7  ;;  %v3502_v3 = vld [vmem:[%s4832_s4 + $0x1] ss:$0 sm:$0xff]  ;;  %v255_v8 = vmul.f32 %v3489_v49, %v3370_v46  ;;  %v260_v46 = vmul.f32 %v3489_v49, %v3392_v60 }
 0x113   :  { %v3422_v13 = vmax.f32 %v190_v11, 0.0  ;;  %v3434_v17 = vmul.f32 %v3350_v39, %v3415_v10 }
 0x114   :  { %v3430_v15 = vmul.f32 %v3350_v39, %v3419_v12 }
 0x115   :  { %4884 = vst [vmem:[#allocation8_spill] sm:$0xff] %v3422_v13  ;;  %v2818_v16 = vpop.f32.mrb[12].mxu0  ;;  %v3438_v18 = vmul.f32 %v3350_v39, %v3422_v13 }
 0x116   :  { %v211_v19 = vadd.f32 %v2818_v16, %v3340_v28  ;;  %v202_v20 = vpop.f32.mrb[13].mxu0  ;;  %v275_v21 = vpack.c.bf16 %v3430_v15, %v3426_v14 }
 0x117   :  { %v203_v22 = vadd.f32 %v3340_v28, %v202_v20  ;;  %v2819_v23 = vpop.f32.mrb[14].mxu0  ;;  %v274_v24 = vpack.c.bf16 %v3438_v18, %v3434_v17 }
 0x118   :  { %v3446_v25 = vmax.f32 %v211_v19, 0.0  ;;  %v214_v26 = vadd.f32 %v2819_v23, %v3340_v28  ;;  %v205_v27 = vpop.f32.mrb[15].mxu0  ;;  %v258_v23 = vmul.f32 %v3489_v49, %v3400_v63 }
 0x119   :  { %v3449_v29 = vmax.f32 %v203_v22, 0.0  ;;  %v206_v30 = vadd.f32 %v3340_v28, %v205_v27  ;;  %2832 = vmatprep.mubr.msk.bf16.mxu1 %vm95_vm0, %v274_v24 }
 0x11a   :  { %4885 = vst [vmem:[#allocation9_spill] sm:$0xff] %v3446_v25  ;;  %v3453_v31 = vmax.f32 %v214_v26, 0.0  ;;  %2833 = vmatmul.mubr.msk.bf16.gmra.mrb[8].mxu1 %vm95_vm0, %v275_v21  ;;  %v3460_v33 = vmul.f32 %v3350_v39, %v3446_v25 }
 0x11b   :  { %4886 = vst [vmem:[#allocation10_spill] sm:$0xff] %v3449_v29  ;;  %v3456_v32 = vmax.f32 %v206_v30, 0.0  ;;  %v3468_v36 = vmul.f32 %v3350_v39, %v3449_v29 }
 0x11c   :  { %4887 = vst [vmem:[#allocation11_spill] sm:$0xff] %v3453_v31  ;;  %v3464_v35 = vmul.f32 %v3350_v39, %v3453_v31 }
 0x11d   :  { %4888 = vst [vmem:[#allocation12_spill] sm:$0xff] %v3456_v32  ;;  %v3472_v28 = vmul.f32 %v3350_v39, %v3456_v32  ;;  %v3101_v39 = vld [vmem:[%s4831_s3 + $0x28] sm:$0xff]  }
 0x11e   :  { %v277_v38 = vpack.c.bf16 %v3464_v35, %v3460_v33  ;;  %2874 = vmatprep.subr.bf16.mxu1 %v3101_v39 }
 0x11f   :  { %v276_v44 = vpack.c.bf16 %v3472_v28, %v3468_v36  ;;  %2875 = vmatpush3.bf16.msra.mxu1 %v3101_v39  ;;  %v261_v39 = vmul.f32 %v3489_v49, %v3396_v61 }
 0x121   :  { %2836 = vmatprep.mubr.msk.bf16.mxu1 %vm95_vm0, %v276_v44 }
 0x122   :  { %2837 = vmatmul.mubr.msk.bf16.gmra.mrb[12].mxu1 %vm95_vm0, %v277_v38 }
 0x1dd   :  { %v2826_v51 = vpop.f32.mrb[0].mxu1 }
 0x1de   :  { %v419_v54 = vmul.f32 %v2826_v51, %v3491_v50  ;;  %v353_v55 = vpop.f32.mrb[1].mxu1  ;;  %v259_v51 = vmul.f32 %v3489_v49, %v3404_v0 }
 0x1df   :  { %v417_v62 = vmul.f32 %v3491_v50, %v353_v55  ;;  %v2827_v1 = vpop.f32.mrb[2].mxu1 }
 0x1e0   :  { %v435_v2 = vadd.f32 %v419_v54, %v256_v52  ;;  %v420_v42 = vmul.f32 %v2827_v1, %v3491_v50  ;;  %v356_v5 = vpop.f32.mrb[3].mxu1 }
 0x1e1   :  { %v433_v6 = vadd.f32 %v417_v62, %v254_v57  ;;  %v418_v45 = vmul.f32 %v3491_v50, %v356_v5 }
 0x1e2   :  { %v436_v9 = vadd.f32 %v420_v42, %v257_v4  ;;  %v3517_v20 = vadd.f32 %v3502_v3, %v435_v2 }
 0x1e3   :  { %v3511_v11 = vadd.f32 %v3502_v3, %v433_v6  ;;  %v434_v16 = vadd.f32 %v418_v45, %v255_v8  ;;  %v264_v6 = vmul.f32 %v3489_v49, %v3426_v14  ;;  %v262_v45 = vmul.f32 %v3489_v49, %v3434_v17 }
 0x1e4   :  { %v3514_v19 = vadd.f32 %v3502_v3, %v436_v9  ;;  %v4849_v52 = vmax.f32 %v3517_v20, 0.0 }
 0x1e5   :  { %v3520_v43 = vadd.f32 %v3502_v3, %v434_v16  ;;  %v2830_v21 = vpop.f32.mrb[4].mxu1  ;;  %v4848_v26 = vmax.f32 %v3511_v11, 0.0 }
 0x1e6   :  { %v423_v22 = vmul.f32 %v2830_v21, %v3491_v50  ;;  %v369_v24 = vpop.f32.mrb[5].mxu1  ;;  %v4847_v27 = vmax.f32 %v3514_v19, 0.0 }
 0x1e7   :  { %v4846_v30 = vmax.f32 %v3520_v43, 0.0  ;;  %v421_v38 = vmul.f32 %v3491_v50, %v369_v24  ;;  %v2831_v44 = vpop.f32.mrb[6].mxu1 }
 0x1e8   :  { %v439_v48 = vadd.f32 %v423_v22, %v260_v46  ;;  %v424_v60 = vmul.f32 %v2831_v44, %v3491_v50  ;;  %v372_v63 = vpop.f32.mrb[7].mxu1  ;;  %v508_v0 = vpack.c.bf16 %v4847_v27, %v4849_v52  ;;  %v263_v44 = vmul.f32 %v3489_v49, %v3438_v18 }
 0x1e9   :  { %v437_v54 = vadd.f32 %v421_v38, %v258_v23  ;;  %v422_v55 = vmul.f32 %v3491_v50, %v372_v63  ;;  %v507_v57 = vpack.c.bf16 %v4846_v30, %v4848_v26  ;;  %v265_v38 = vmul.f32 %v3489_v49, %v3430_v15 }
 0x1ea   :  { %v440_v62 = vadd.f32 %v424_v60, %v261_v39  ;;  %v3553_v4 = vadd.f32 %v3502_v3, %v439_v48 }
 0x1eb   :  { %v3543_v1 = vadd.f32 %v3502_v3, %v437_v54  ;;  %v438_v61 = vadd.f32 %v422_v55, %v259_v51  ;;  %2840 = vmatprep.subr.bf16.mxu0 %v507_v57 }
 0x1ec   :  { %v3550_v2 = vadd.f32 %v3502_v3, %v440_v62  ;;  %2841 = vmatpush3.bf16.msra.mxu0 %v507_v57  ;;  %v4845_v48 = vmax.f32 %v3553_v4, 0.0 }
 0x1ed   :  { %v3556_v42 = vadd.f32 %v3502_v3, %v438_v61  ;;  %v2834_v5 = vpop.f32.mrb[8].mxu1  ;;  %2842 = vmatprep.subr.bf16.mxu0 %v508_v0  ;;  %v4844_v16 = vmax.f32 %v3543_v1, 0.0 }
 0x1ee   :  { %v427_v8 = vmul.f32 %v2834_v5, %v3491_v50  ;;  %v385_v9 = vpop.f32.mrb[9].mxu1  ;;  %v4843_v21 = vmax.f32 %v3550_v2, 0.0 }
 0x1ef   :  { %v4842_v46 = vmax.f32 %v3556_v42, 0.0  ;;  %v425_v22 = vmul.f32 %v3491_v50, %v385_v9  ;;  %v2835_v23 = vpop.f32.mrb[10].mxu1 }
 0x1f0   :  { %v443_v24 = vadd.f32 %v427_v8, %v264_v6  ;;  %v428_v14 = vmul.f32 %v2835_v23, %v3491_v50  ;;  %v388_v17 = vpop.f32.mrb[11].mxu1  ;;  %2843 = vmatpush3.bf16.msra.mxu0 %v508_v0  ;;  %v510_v18 = vpack.c.bf16 %v4843_v21, %v4845_v48  ;;  %v268_v0 = vmul.f32 %v3489_v49, %v3460_v33 }
 0x1f1   :  { %v441_v39 = vadd.f32 %v425_v22, %v262_v45  ;;  %v426_v60 = vmul.f32 %v3491_v50, %v388_v17  ;;  %v509_v51 = vpack.c.bf16 %v4842_v46, %v4844_v16  ;;  %v266_v6 = vmul.f32 %v3489_v49, %v3468_v36 }
 0x1f2   :  { %v444_v63 = vadd.f32 %v428_v14, %v265_v38  ;;  %v3589_v57 = vadd.f32 %v3502_v3, %v443_v24  ;;  %v269_v14 = vmul.f32 %v3489_v49, %v3464_v35 }
 0x1f3   :  { %v3579_v15 = vadd.f32 %v3502_v3, %v441_v39  ;;  %v442_v54 = vadd.f32 %v426_v60, %v263_v44  ;;  %2844 = vmatprep.subr.bf16.mxu0 %v509_v51  ;;  %v267_v44 = vmul.f32 %v3489_v49, %v3472_v28 }
 0x1f4   :  { %v3586_v55 = vadd.f32 %v3502_v3, %v444_v63  ;;  %2845 = vmatpush3.bf16.msra.mxu0 %v509_v51  ;;  %v4841_v17 = vmax.f32 %v3589_v57, 0.0 }
 0x1f5   :  { %v3592_v62 = vadd.f32 %v3502_v3, %v442_v54  ;;  %v2838_v61 = vpop.f32.mrb[12].mxu1  ;;  %2846 = vmatprep.subr.bf16.mxu0 %v510_v18  ;;  %v4840_v45 = vmax.f32 %v3579_v15, 0.0 }
 0x1f6   :  { %v431_v5 = vmul.f32 %v2838_v61, %v3491_v50  ;;  %v401_v8 = vpop.f32.mrb[13].mxu1  ;;  %v4839_v9 = vmax.f32 %v3586_v55, 0.0 }
 0x1f7   :  { %v4838_v22 = vmax.f32 %v3592_v62, 0.0  ;;  %v429_v23 = vmul.f32 %v3491_v50, %v401_v8  ;;  %v2839_v24 = vpop.f32.mrb[14].mxu1 }
 0x1f8   :  { %v447_v38 = vadd.f32 %v431_v5, %v268_v0  ;;  %v432_v33 = vmul.f32 %v2839_v24, %v3491_v50  ;;  %v404_v36 = vpop.f32.mrb[15].mxu1  ;;  %2847 = vmatpush3.bf16.msra.mxu0 %v510_v18  ;;  %v512_v28 = vpack.c.bf16 %v4839_v9, %v4841_v17  ;;  %v3644_v24 = vld [vmem:[#allocation5 + $0x10] sm:$0xff]  }
 0x1f9   :  { %v445_v39 = vadd.f32 %v429_v23, %v266_v6  ;;  %v430_v60 = vmul.f32 %v3491_v50, %v404_v36  ;;  %v511_v51 = vpack.c.bf16 %v4838_v22, %v4840_v45  ;;  %v3642_v23 = vld [vmem:[#allocation5 + $0x8] sm:$0xff]   ;;  %v3660_v36 = vld [vmem:[#allocation5 + $0x38] sm:$0xff]  }
 0x1fa   :  { %v448_v63 = vadd.f32 %v432_v33, %v269_v14  ;;  %v3625_v50 = vadd.f32 %v3502_v3, %v447_v38  ;;  %v3648_v38 = vld [vmem:[#allocation5 + $0x18] sm:$0xff]   ;;  %v3650_v14 = vld [vmem:[#allocation5 + $0x20] sm:$0xff]   ;;  %v3654_v33 = vld [vmem:[#allocation5 + $0x28] sm:$0xff]  }
 0x1fb   :  { %v3615_v35 = vadd.f32 %v3502_v3, %v445_v39  ;;  %v446_v54 = vadd.f32 %v430_v60, %v267_v44  ;;  %2848 = vmatprep.subr.bf16.mxu0 %v511_v51  ;;  %v3656_v44 = vld [vmem:[#allocation5 + $0x30] sm:$0xff]   ;;  %v3664_v39 = vstv %s2570_s7 }
 0x1fc   :  { %v3622_v49 = vadd.f32 %v3502_v3, %v448_v63  ;;  %2849 = vmatpush3.bf16.msra.mxu0 %v511_v51  ;;  %4891 = vst [vmem:[#allocation15_spill] sm:$0xff] %v3625_v50  ;;  %v4837_v6 = vmax.f32 %v3625_v50, 0.0  ;;  %v679_v63 = vmul.f32 %v3664_v39, %v3344_v34  ;;  %v681_v46 = vmul.f32 %v3664_v39, %v3381_v56 }
 0x1fd   :  { %4889 = vst [vmem:[#allocation13_spill] sm:$0xff] %v3615_v35  ;;  %v3628_v18 = vadd.f32 %v3502_v3, %v446_v54  ;;  %2850 = vmatprep.subr.bf16.mxu0 %v512_v28  ;;  %v4836_v61 = vmax.f32 %v3615_v35, 0.0 }
 0x1fe   :  { %4890 = vst [vmem:[#allocation14_spill] sm:$0xff] %v3622_v49  ;;  %v4835_v0 = vmax.f32 %v3622_v49, 0.0 }
 0x1ff   :  { %4892 = vst [vmem:[#allocation16_spill] sm:$0xff] %v3628_v18  ;;  %v4834_v5 = vmax.f32 %v3628_v18, 0.0 }
 0x200   :  { %2851 = vmatpush3.bf16.msra.mxu0 %v512_v28  ;;  %v514_v3 = vpack.c.bf16 %v4835_v0, %v4837_v6 }
 0x201   :  { %v513_v8 = vpack.c.bf16 %v4834_v5, %v4836_v61  ;;  %v680_v61 = vmul.f32 %v3664_v39, %v3352_v40 }
 0x203   :  { %2852 = vmatprep.subr.bf16.mxu0 %v513_v8 }
 0x204   :  { %2853 = vmatpush3.bf16.msra.mxu0 %v513_v8  ;;  %v677_v8 = vmul.f32 %v3664_v39, %v3347_v37 }
 0x205   :  { %2854 = vmatprep.subr.bf16.mxu0 %v514_v3 }
 0x208   :  { %2855 = vmatpush3.bf16.msra.mxu0 %v514_v3 }
 0x20b   :  { %2857 = vmatmul.mubr.bf16.vlgmr.msra.gmra.mrb[16].mxu0 %v3642_v23 }
 0x20c   :  { %2860 = vmatprep.mubr.bf16.mxu0 %v3644_v24 }
 0x213   :  { %2861 = vmatmul.mubr.bf16.gmra.mrb[20].mxu0 %v3648_v38 }
 0x214   :  { %2864 = vmatprep.mubr.bf16.mxu0 %v3650_v14 }
 0x21b   :  { %2865 = vmatmul.mubr.bf16.gmra.mrb[24].mxu0 %v3654_v33 }
 0x21c   :  { %2868 = vmatprep.mubr.bf16.mxu0 %v3656_v44 }
 0x223   :  { %2869 = vmatmul.mubr.bf16.gmra.mrb[28].mxu0 %v3660_v36 }
 0x224   :  { %2908 = vmatprep.mubr.bf16.mxu0 %v3480_v47 }
 0x2de   :  { %v2858_v60 = vpop.f32.mrb[16].mxu0 }
 0x2df   :  { %v662_v51 = vmul.f32 2.0, %v2858_v60  ;;  %v597_v54 = vpop.f32.mrb[17].mxu0  ;;  %v678_v60 = vmul.f32 %v3664_v39, %v3354_v41 }
 0x2e0   :  { %v660_v28 = vmul.f32 2.0, %v597_v54  ;;  %v2859_v3 = vpop.f32.mrb[18].mxu0 }
 0x2e1   :  { %v3670_v5 = vadd.f32 %v679_v63, %v662_v51  ;;  %v663_v0 = vmul.f32 2.0, %v2859_v3  ;;  %v600_v6 = vpop.f32.mrb[19].mxu0 }
 0x2e2   :  { %v3674_v22 = vadd.f32 %v677_v8, %v660_v28  ;;  %v661_v9 = vmul.f32 2.0, %v600_v6  ;;  %v683_v28 = vmul.f32 %v3664_v39, %v3378_v53 }
 0x2e3   :  { %v3678_v45 = vadd.f32 %v680_v61, %v663_v0 }
 0x2e4   :  { %v3680_v54 = vadd.f32 %v678_v60, %v661_v9  ;;  %v684_v60 = vmul.f32 %v3664_v39, %v3385_v58 }
 0x2e5   :  { %v728_v17 = vpack.c.bf16 %v3678_v45, %v3670_v5 }
 0x2e6   :  { %v727_v51 = vpack.c.bf16 %v3680_v54, %v3674_v22  ;;  %v2862_v63 = vpop.f32.mrb[20].mxu0 }
 0x2e7   :  { %v666_v3 = vmul.f32 2.0, %v2862_v63  ;;  %v613_v8 = vpop.f32.mrb[21].mxu0 }
 0x2e8   :  { %v664_v6 = vmul.f32 2.0, %v613_v8  ;;  %v2863_v61 = vpop.f32.mrb[22].mxu0  ;;  %2876 = vmatprep.mubr.msk.bf16.mxu1 %vm95_vm0, %v727_v51  ;;  %v682_v8 = vmul.f32 %v3664_v39, %v3388_v59 }
 0x2e9   :  { %v3691_v9 = vadd.f32 %v683_v28, %v666_v3  ;;  %v667_v0 = vmul.f32 2.0, %v2863_v61  ;;  %v616_v21 = vpop.f32.mrb[23].mxu0  ;;  %2877 = vmatmul.mubr.msk.bf16.vlgmr.msra.gmra.mrb[16].mxu1 %vm95_vm0, %v728_v17 }
 0x2ea   :  { %v3696_v63 = vadd.f32 %v681_v46, %v664_v6  ;;  %v665_v16 = vmul.f32 2.0, %v616_v21  ;;  %v687_v46 = vmul.f32 %v3664_v39, %v3412_v7  ;;  %v685_v6 = vmul.f32 %v3664_v39, %v3415_v10 }
 0x2eb   :  { %v3700_v48 = vadd.f32 %v684_v60, %v667_v0 }
 0x2ec   :  { %v3702_v30 = vadd.f32 %v682_v8, %v665_v16  ;;  %v688_v8 = vmul.f32 %v3664_v39, %v3419_v12 }
 0x2ed   :  { %v730_v51 = vpack.c.bf16 %v3700_v48, %v3691_v9 }
 0x2ee   :  { %v729_v3 = vpack.c.bf16 %v3702_v30, %v3696_v63  ;;  %v2866_v28 = vpop.f32.mrb[24].mxu0 }
 0x2ef   :  { %v670_v61 = vmul.f32 2.0, %v2866_v28  ;;  %v629_v17 = vpop.f32.mrb[25].mxu0 }
 0x2f0   :  { %v668_v21 = vmul.f32 2.0, %v629_v17  ;;  %v2867_v0 = vpop.f32.mrb[26].mxu0  ;;  %2880 = vmatprep.mubr.msk.bf16.mxu1 %vm95_vm0, %v729_v3  ;;  %v686_v17 = vmul.f32 %v3664_v39, %v3422_v13 }
 0x2f1   :  { %v3713_v16 = vadd.f32 %v687_v46, %v670_v61  ;;  %v671_v60 = vmul.f32 2.0, %v2867_v0  ;;  %v632_v27 = vpop.f32.mrb[27].mxu0  ;;  %2881 = vmatmul.mubr.msk.bf16.gmra.mrb[20].mxu1 %vm95_vm0, %v730_v51  ;;  %v691_v51 = vmul.f32 %v3664_v39, %v3446_v25 }
 0x2f2   :  { %v3718_v28 = vadd.f32 %v685_v6, %v668_v21  ;;  %v669_v26 = vmul.f32 2.0, %v632_v27  ;;  %v689_v6 = vmul.f32 %v3664_v39, %v3449_v29 }
 0x2f3   :  { %v3722_v52 = vadd.f32 %v688_v8, %v671_v60 }
 0x2f4   :  { %v3724_v18 = vadd.f32 %v686_v17, %v669_v26  ;;  %v692_v17 = vmul.f32 %v3664_v39, %v3453_v31 }
 0x2f5   :  { %v732_v3 = vpack.c.bf16 %v3722_v52, %v3713_v16 }
 0x2f6   :  { %v731_v61 = vpack.c.bf16 %v3724_v18, %v3718_v28  ;;  %v2870_v46 = vpop.f32.mrb[28].mxu0 }
 0x2f7   :  { %v674_v0 = vmul.f32 2.0, %v2870_v46  ;;  %v645_v21 = vpop.f32.mrb[29].mxu0 }
 0x2f8   :  { %v672_v27 = vmul.f32 2.0, %v645_v21  ;;  %v2871_v60 = vpop.f32.mrb[30].mxu0  ;;  %2884 = vmatprep.mubr.msk.bf16.mxu1 %vm95_vm0, %v731_v61  ;;  %v690_v21 = vmul.f32 %v3664_v39, %v3456_v32  ;;  %v3103_v39 = vld [vmem:[%s4831_s3 + $0x38] sm:$0xff]  }
 0x2f9   :  { %v3735_v26 = vadd.f32 %v691_v51, %v674_v0  ;;  %v675_v8 = vmul.f32 2.0, %v2871_v60  ;;  %v648_v49 = vpop.f32.mrb[31].mxu0  ;;  %2885 = vmatmul.mubr.msk.bf16.gmra.mrb[24].mxu1 %vm95_vm0, %v732_v3  ;;  %v3762_v3 = vstv %s2571_s12  ;;  %s1920_s12 = ssub.f32 1.0, %s2633_s11 }
 0x2fa   :  { %v3740_v46 = vadd.f32 %v689_v6, %v672_v27  ;;  %v673_v35 = vmul.f32 2.0, %v648_v49  ;;  %v3102_v49 = vld [vmem:[%s4831_s3 + $0x30] sm:$0xff]  }
 0x2fb   :  { %v3744_v25 = vadd.f32 %v692_v17, %v675_v8  ;;  %2924 = vmatprep.subr.bf16.mxu1 %v3102_v49 }
 0x2fc   :  { %v3746_v29 = vadd.f32 %v690_v21, %v673_v35  ;;  %2925 = vmatpush3.bf16.msra.mxu1 %v3102_v49  ;;  %v3760_v35 = vstv %s709_s13 }
 0x2fd   :  { %v734_v61 = vpack.c.bf16 %v3744_v25, %v3735_v26  ;;  %2926 = vmatprep.subr.bf16.mxu1 %v3103_v39  ;;  %v713_v27 = vmul.f32 %v3760_v35, %v3670_v5  ;;  %v711_v8 = vmul.f32 %v3760_v35, %v3674_v22  ;;  %v714_v49 = vmul.f32 %v3760_v35, %v3678_v45 }
 0x2fe   :  { %v733_v0 = vpack.c.bf16 %v3746_v29, %v3740_v46  ;;  %v712_v32 = vmul.f32 %v3760_v35, %v3680_v54  ;;  %v717_v54 = vmul.f32 %v3760_v35, %v3691_v9 }
 0x300   :  { %2888 = vmatprep.mubr.msk.bf16.mxu1 %vm95_vm0, %v733_v0  ;;  %2927 = vmatpush3.bf16.msra.mxu1 %v3103_v39  ;;  %v3773_v0 = vld [vmem:[%s4832_s4 + $0x2] ss:$0 sm:$0xff] }
 0x301   :  { %2889 = vmatmul.mubr.msk.bf16.gmra.mrb[28].mxu1 %vm95_vm0, %v734_v61 }
 0x3bc   :  { %v2878_v51 = vpop.f32.mrb[16].mxu1 }
 0x3bd   :  { %v876_v6 = vmul.f32 %v2878_v51, %v3762_v3  ;;  %v810_v60 = vpop.f32.mrb[17].mxu1 }
 0x3be   :  { %v874_v17 = vmul.f32 %v3762_v3, %v810_v60  ;;  %v2879_v21 = vpop.f32.mrb[18].mxu1 }
 0x3bf   :  { %v892_v61 = vadd.f32 %v876_v6, %v713_v27  ;;  %v877_v5 = vmul.f32 %v2879_v21, %v3762_v3  ;;  %v813_v39 = vpop.f32.mrb[19].mxu1  ;;  %v715_v21 = vmul.f32 %v3760_v35, %v3696_v63 }
 0x3c0   :  { %v890_v51 = vadd.f32 %v874_v17, %v711_v8  ;;  %v875_v22 = vmul.f32 %v3762_v3, %v813_v39 }
 0x3c1   :  { %v893_v60 = vadd.f32 %v877_v5, %v714_v49  ;;  %v3788_v50 = vadd.f32 %v3773_v0, %v892_v61 }
 0x3c2   :  { %v3782_v27 = vadd.f32 %v3773_v0, %v890_v51  ;;  %v891_v6 = vadd.f32 %v875_v22, %v712_v32 }
 0x3c3   :  { %v3785_v31 = vadd.f32 %v3773_v0, %v893_v60  ;;  %v718_v60 = vmul.f32 %v3760_v35, %v3700_v48 }
 0x3c4   :  { %v3791_v45 = vadd.f32 %v3773_v0, %v891_v6  ;;  %v2882_v8 = vpop.f32.mrb[20].mxu1  ;;  %v716_v6 = vmul.f32 %v3760_v35, %v3702_v30  ;;  %v4893_v61 = vmax.f32 %v3782_v27, 0.0 }
 0x3c5   :  { %v880_v17 = vmul.f32 %v2882_v8, %v3762_v3  ;;  %v826_v49 = vpop.f32.mrb[21].mxu1  ;;  %v4864_v8 = vmax.f32 %v3788_v50, 0.0  ;;  %v4895_v30 = vmax.f32 %v3785_v31, 0.0 }
 0x3c6   :  { %v878_v39 = vmul.f32 %v3762_v3, %v826_v49  ;;  %v2883_v51 = vpop.f32.mrb[22].mxu1  ;;  %v4894_v49 = vmax.f32 %v3791_v45, 0.0 }
 0x3c7   :  { %v896_v22 = vadd.f32 %v880_v17, %v717_v54  ;;  %v881_v9 = vmul.f32 %v2883_v51, %v3762_v3  ;;  %v829_v63 = vpop.f32.mrb[23].mxu1  ;;  %v949_v51 = vpack.c.bf16 %v4895_v30, %v4864_v8  ;;  %v722_v30 = vmul.f32 %v3760_v35, %v3722_v52 }
 0x3c8   :  { %v894_v32 = vadd.f32 %v878_v39, %v715_v21  ;;  %v879_v5 = vmul.f32 %v3762_v3, %v829_v63  ;;  %v948_v13 = vpack.c.bf16 %v4894_v49, %v4893_v61 }
 0x3c9   :  { %v897_v54 = vadd.f32 %v881_v9, %v718_v60  ;;  %v3824_v39 = vadd.f32 %v3773_v0, %v896_v22  ;;  %v719_v9 = vmul.f32 %v3760_v35, %v3718_v28 }
 0x3ca   :  { %v3814_v17 = vadd.f32 %v3773_v0, %v894_v32  ;;  %v895_v48 = vadd.f32 %v879_v5, %v716_v6  ;;  %2892 = vmatprep.subr.bf16.mxu0 %v948_v13  ;;  %v721_v32 = vmul.f32 %v3760_v35, %v3713_v16 }
 0x3cb   :  { %v3821_v21 = vadd.f32 %v3773_v0, %v897_v54  ;;  %2893 = vmatpush3.bf16.msra.mxu0 %v948_v13  ;;  %v4865_v8 = vmax.f32 %v3824_v39, 0.0 }
 0x3cc   :  { %v3827_v61 = vadd.f32 %v3773_v0, %v895_v48  ;;  %v2886_v60 = vpop.f32.mrb[24].mxu1  ;;  %2894 = vmatprep.subr.bf16.mxu0 %v949_v51  ;;  %v4896_v22 = vmax.f32 %v3814_v17, 0.0 }
 0x3cd   :  { %v884_v5 = vmul.f32 %v2886_v60, %v3762_v3  ;;  %v842_v6 = vpop.f32.mrb[25].mxu1  ;;  %v720_v60 = vmul.f32 %v3760_v35, %v3724_v18  ;;  %v4898_v18 = vmax.f32 %v3821_v21, 0.0 }
 0x3ce   :  { %v882_v49 = vmul.f32 %v3762_v3, %v842_v6  ;;  %v2887_v54 = vpop.f32.mrb[26].mxu1  ;;  %v4897_v6 = vmax.f32 %v3827_v61, 0.0 }
 0x3cf   :  { %v900_v48 = vadd.f32 %v884_v5, %v721_v32  ;;  %v885_v16 = vmul.f32 %v2887_v54, %v3762_v3  ;;  %v845_v28 = vpop.f32.mrb[27].mxu1  ;;  %2895 = vmatpush3.bf16.msra.mxu0 %v949_v51  ;;  %v951_v51 = vpack.c.bf16 %v4898_v18, %v4865_v8  ;;  %v726_v18 = vmul.f32 %v3760_v35, %v3744_v25 }
 0x3d0   :  { %v898_v63 = vadd.f32 %v882_v49, %v719_v9  ;;  %v883_v13 = vmul.f32 %v3762_v3, %v845_v28  ;;  %v950_v32 = vpack.c.bf16 %v4897_v6, %v4896_v22 }
 0x3d1   :  { %v901_v5 = vadd.f32 %v885_v16, %v722_v30  ;;  %v3860_v49 = vadd.f32 %v3773_v0, %v900_v48  ;;  %v723_v16 = vmul.f32 %v3760_v35, %v3740_v46 }
 0x3d2   :  { %v3850_v52 = vadd.f32 %v3773_v0, %v898_v63  ;;  %v899_v54 = vadd.f32 %v883_v13, %v720_v60  ;;  %2896 = vmatprep.subr.bf16.mxu0 %v950_v32  ;;  %v725_v63 = vmul.f32 %v3760_v35, %v3735_v26 }
 0x3d3   :  { %v3857_v9 = vadd.f32 %v3773_v0, %v901_v5  ;;  %2897 = vmatpush3.bf16.msra.mxu0 %v950_v32  ;;  %v4870_v8 = vmax.f32 %v3860_v49, 0.0 }
 0x3d4   :  { %v3863_v22 = vadd.f32 %v3773_v0, %v899_v54  ;;  %v2890_v30 = vpop.f32.mrb[28].mxu1  ;;  %2898 = vmatprep.subr.bf16.mxu0 %v951_v51  ;;  %v4899_v48 = vmax.f32 %v3850_v52, 0.0 }
 0x3d5   :  { %v888_v13 = vmul.f32 %v2890_v30, %v3762_v3  ;;  %v858_v60 = vpop.f32.mrb[29].mxu1  ;;  %v724_v30 = vmul.f32 %v3760_v35, %v3746_v29  ;;  %v4902_v29 = vmax.f32 %v3857_v9, 0.0 }
 0x3d6   :  { %v886_v32 = vmul.f32 %v3762_v3, %v858_v60  ;;  %v2891_v5 = vpop.f32.mrb[30].mxu1  ;;  %v4900_v60 = vmax.f32 %v3863_v22, 0.0 }
 0x3d7   :  { %v904_v54 = vadd.f32 %v888_v13, %v725_v63  ;;  %v889_v26 = vmul.f32 %v2891_v5, %v3762_v3  ;;  %v861_v46 = vpop.f32.mrb[31].mxu1  ;;  %2899 = vmatpush3.bf16.msra.mxu0 %v951_v51  ;;  %v953_v35 = vpack.c.bf16 %v4902_v29, %v4870_v8 }
 0x3d8   :  { %v902_v28 = vadd.f32 %v886_v32, %v723_v16  ;;  %v887_v6 = vmul.f32 %v3762_v3, %v861_v46  ;;  %v952_v63 = vpack.c.bf16 %v4900_v60, %v4899_v48 }
 0x3d9   :  { %v905_v13 = vadd.f32 %v889_v26, %v726_v18  ;;  %v3896_v3 = vadd.f32 %v3773_v0, %v904_v54  ;;  %v3921_v26 = vstv %s2596_s16 }
 0x3da   :  { %v3886_v25 = vadd.f32 %v3773_v0, %v902_v28  ;;  %v903_v5 = vadd.f32 %v887_v6, %v724_v30  ;;  %2900 = vmatprep.subr.bf16.mxu0 %v952_v63  ;;  %v1088_v29 = vmul.f32 %v3921_v26, %v3344_v34 }
 0x3db   :  { %v3893_v51 = vadd.f32 %v3773_v0, %v905_v13  ;;  %2901 = vmatpush3.bf16.msra.mxu0 %v952_v63  ;;  %4904 = vst [vmem:[#allocation19_spill] sm:$0xff] %v3896_v3  ;;  %v4869_v32 = vmax.f32 %v3896_v3, 0.0  ;;  %v4906_v13 = vmax.f32 %v3517_v20, 0.0  ;;  %v1089_v20 = vmul.f32 %v3921_v26, %v3352_v40 }
 0x3dc   :  { %4901 = vst [vmem:[#allocation17_spill] sm:$0xff] %v3886_v25  ;;  %v3899_v16 = vadd.f32 %v3773_v0, %v903_v5  ;;  %2902 = vmatprep.subr.bf16.mxu0 %v953_v35  ;;  %v4868_v28 = vmax.f32 %v3886_v25, 0.0 }
 0x3dd   :  { %4903 = vst [vmem:[#allocation18_spill] sm:$0xff] %v3893_v51  ;;  %v4867_v6 = vmax.f32 %v3893_v51, 0.0  ;;  %v4924_v51 = vld [vmem:[#allocation10_spill] sm:$0xff] }
 0x3de   :  { %4905 = vst [vmem:[#allocation20_spill] sm:$0xff] %v3899_v16  ;;  %v4866_v48 = vmax.f32 %v3899_v16, 0.0 }
 0x3df   :  { %2903 = vmatpush3.bf16.msra.mxu0 %v953_v35  ;;  %v955_v0 = vpack.c.bf16 %v4867_v6, %v4869_v32 }
 0x3e0   :  { %v954_v18 = vpack.c.bf16 %v4866_v48, %v4868_v28 }
 0x3e2   :  { %2904 = vmatprep.subr.bf16.mxu0 %v954_v18 }
 0x3e3   :  { %2905 = vmatpush3.bf16.msra.mxu0 %v954_v18 }
 0x3e4   :  { %2906 = vmatprep.subr.bf16.mxu0 %v955_v0 }
 0x3e7   :  { %2907 = vmatpush3.bf16.msra.mxu0 %v955_v0  ;;  %v4907_v0 = vmax.f32 %v3511_v11, 0.0  ;;  %v1087_v11 = vmul.f32 %v3921_v26, %v3354_v41 }
 0x3ea   :  { %2909 = vmatmul.mubr.bf16.vlgmr.msra.gmra.mrb[32].mxu0 %v3642_v23 }
 0x3eb   :  { %2912 = vmatprep.mubr.bf16.mxu0 %v3644_v24 }
 0x3f2   :  { %2913 = vmatmul.mubr.bf16.gmra.mrb[36].mxu0 %v3648_v38 }
 0x3f3   :  { %2916 = vmatprep.mubr.bf16.mxu0 %v3650_v14 }
 0x3fa   :  { %2917 = vmatmul.mubr.bf16.gmra.mrb[40].mxu0 %v3654_v33 }
 0x3fb   :  { %2920 = vmatprep.mubr.bf16.mxu0 %v3656_v44 }
 0x402   :  { %2921 = vmatmul.mubr.bf16.gmra.mrb[44].mxu0 %v3660_v36 }
 0x403   :  { %2960 = vmatprep.mubr.bf16.mxu0 %v3480_v47  ;;  %v1086_v47 = vmul.f32 %v3921_v26, %v3347_v37 }
 0x4bd   :  { %v2910_v54 = vpop.f32.mrb[32].mxu0 }
 0x4be   :  { %v1055_v30 = vmul.f32 2.0, %v2910_v54  ;;  %v990_v46 = vpop.f32.mrb[33].mxu0  ;;  %v4908_v54 = vmax.f32 %v3514_v19, 0.0 }
 0x4bf   :  { %v1053_v60 = vmul.f32 2.0, %v990_v46  ;;  %v2911_v63 = vpop.f32.mrb[34].mxu0 }
 0x4c0   :  { %v1071_v5 = vsub.f32 %v1055_v30, %v4906_v13  ;;  %v1056_v35 = vmul.f32 2.0, %v2911_v63  ;;  %v993_v18 = vpop.f32.mrb[35].mxu0  ;;  %v4909_v63 = vmax.f32 %v3520_v43, 0.0  ;;  %v4910_v43 = vmax.f32 %v3553_v4, 0.0 }
 0x4c1   :  { %v1069_v48 = vsub.f32 %v1053_v60, %v4907_v0  ;;  %v1054_v6 = vmul.f32 2.0, %v993_v18 }
 0x4c2   :  { %v3931_v28 = vadd.f32 %v1088_v29, %v1071_v5  ;;  %v1072_v46 = vsub.f32 %v1056_v35, %v4908_v54  ;;  %v1092_v54 = vmul.f32 %v3921_v26, %v3378_v53 }
 0x4c3   :  { %v3937_v30 = vadd.f32 %v1086_v47, %v1069_v48  ;;  %v1070_v13 = vsub.f32 %v1054_v6, %v4909_v63  ;;  %v4911_v63 = vmax.f32 %v3543_v1, 0.0  ;;  %v4913_v1 = vmax.f32 %v3556_v42, 0.0 }
 0x4c4   :  { %v3943_v60 = vadd.f32 %v1089_v20, %v1072_v46  ;;  %v4914_v42 = vmax.f32 %v3589_v57, 0.0 }
 0x4c5   :  { %v3945_v0 = vadd.f32 %v1087_v11, %v1070_v13  ;;  %v2914_v5 = vpop.f32.mrb[36].mxu0  ;;  %v1090_v11 = vmul.f32 %v3921_v26, %v3381_v56 }
 0x4c6   :  { %v1137_v19 = vpack.c.bf16 %v3943_v60, %v3931_v28  ;;  %v1059_v29 = vmul.f32 2.0, %v2914_v5  ;;  %v1006_v35 = vpop.f32.mrb[37].mxu0 }
 0x4c7   :  { %v1136_v48 = vpack.c.bf16 %v3945_v0, %v3937_v30  ;;  %v1057_v18 = vmul.f32 2.0, %v1006_v35  ;;  %v2915_v47 = vpop.f32.mrb[38].mxu0  ;;  %v4912_v35 = vmax.f32 %v3550_v2, 0.0 }
 0x4c8   :  { %v1075_v6 = vsub.f32 %v1059_v29, %v4910_v43  ;;  %v1060_v46 = vmul.f32 2.0, %v2915_v47  ;;  %v1009_v20 = vpop.f32.mrb[39].mxu0  ;;  %v1093_v29 = vmul.f32 %v3921_v26, %v3385_v58  ;;  %v1091_v43 = vmul.f32 %v3921_v26, %v3388_v59 }
 0x4c9   :  { %v1073_v13 = vsub.f32 %v1057_v18, %v4911_v63  ;;  %v1058_v5 = vmul.f32 2.0, %v1009_v20  ;;  %2928 = vmatprep.mubr.msk.bf16.mxu1 %vm95_vm0, %v1136_v48 }
 0x4ca   :  { %v3960_v32 = vadd.f32 %v1092_v54, %v1075_v6  ;;  %v1076_v4 = vsub.f32 %v1060_v46, %v4912_v35  ;;  %2929 = vmatmul.mubr.msk.bf16.vlgmr.msra.gmra.mrb[32].mxu1 %vm95_vm0, %v1137_v19 }
 0x4cb   :  { %v3967_v47 = vadd.f32 %v1090_v11, %v1073_v13  ;;  %v1074_v18 = vsub.f32 %v1058_v5, %v4913_v1  ;;  %v1096_v5 = vmul.f32 %v3921_v26, %v3412_v7 }
 0x4cc   :  { %v3973_v20 = vadd.f32 %v1093_v29, %v1076_v4  ;;  %v4915_v29 = vmax.f32 %v3579_v15, 0.0  ;;  %v4917_v15 = vmax.f32 %v3592_v62, 0.0  ;;  %v4919_v62 = vld [vmem:[#allocation15_spill] sm:$0xff] }
 0x4cd   :  { %v3975_v48 = vadd.f32 %v1091_v43, %v1074_v18  ;;  %v2918_v6 = vpop.f32.mrb[40].mxu0  ;;  %v1094_v18 = vmul.f32 %v3921_v26, %v3415_v10 }
 0x4ce   :  { %v1139_v2 = vpack.c.bf16 %v3973_v20, %v3960_v32  ;;  %v1063_v54 = vmul.f32 2.0, %v2918_v6  ;;  %v1022_v46 = vpop.f32.mrb[41].mxu0 }
 0x4cf   :  { %v1138_v19 = vpack.c.bf16 %v3975_v48, %v3967_v47  ;;  %v1061_v63 = vmul.f32 2.0, %v1022_v46  ;;  %v2919_v13 = vpop.f32.mrb[42].mxu0  ;;  %v4916_v46 = vmax.f32 %v3586_v55, 0.0 }
 0x4d0   :  { %v1079_v11 = vsub.f32 %v1063_v54, %v4914_v42  ;;  %v1064_v35 = vmul.f32 2.0, %v2919_v13  ;;  %v1025_v4 = vpop.f32.mrb[43].mxu0  ;;  %v1097_v54 = vmul.f32 %v3921_v26, %v3419_v12  ;;  %v4918_v42 = vld [vmem:[#allocation8_spill] sm:$0xff] }
 0x4d1   :  { %v1077_v1 = vsub.f32 %v1061_v63, %v4915_v29  ;;  %v1062_v43 = vmul.f32 2.0, %v1025_v4  ;;  %2932 = vmatprep.mubr.msk.bf16.mxu1 %vm95_vm0, %v1138_v19  ;;  %v1095_v4 = vmul.f32 %v3921_v26, %v4918_v42 }
 0x4d2   :  { %v3990_v6 = vadd.f32 %v1096_v5, %v1079_v11  ;;  %v1080_v57 = vsub.f32 %v1064_v35, %v4916_v46  ;;  %2933 = vmatmul.mubr.msk.bf16.gmra.mrb[36].mxu1 %vm95_vm0, %v1139_v2 }
 0x4d3   :  { %v3997_v13 = vadd.f32 %v1094_v18, %v1077_v1  ;;  %v1078_v63 = vsub.f32 %v1062_v43, %v4917_v15  ;;  %v4920_v43 = vmax.f32 %v4919_v62, 0.0  ;;  %v4921_v15 = vld [vmem:[#allocation9_spill] sm:$0xff] }
 0x4d4   :  { %v4003_v29 = vadd.f32 %v1097_v54, %v1080_v57  ;;  %v1100_v57 = vmul.f32 %v3921_v26, %v4921_v15  ;;  %v4930_v15 = vld [vmem:[#allocation12_spill] sm:$0xff] }
 0x4d5   :  { %v4005_v19 = vadd.f32 %v1095_v4, %v1078_v63  ;;  %v2922_v11 = vpop.f32.mrb[44].mxu0  ;;  %v4922_v4 = vld [vmem:[#allocation13_spill] sm:$0xff] }
 0x4d6   :  { %v1141_v55 = vpack.c.bf16 %v4003_v29, %v3990_v6  ;;  %v1067_v5 = vmul.f32 2.0, %v2922_v11  ;;  %v1038_v35 = vpop.f32.mrb[45].mxu0  ;;  %v4923_v8 = vmax.f32 %v4922_v4, 0.0  ;;  %v1098_v11 = vmul.f32 %v3921_v26, %v4924_v51  ;;  %v4928_v4 = vld [vmem:[#allocation16_spill] sm:$0xff] }
 0x4d7   :  { %v1140_v2 = vpack.c.bf16 %v4005_v19, %v3997_v13  ;;  %v1065_v1 = vmul.f32 2.0, %v1038_v35  ;;  %v2923_v18 = vpop.f32.mrb[46].mxu0  ;;  %v4925_v35 = vld [vmem:[#allocation14_spill] sm:$0xff] }
 0x4d8   :  { %v1083_v46 = vsub.f32 %v1067_v5, %v4920_v43  ;;  %v1068_v54 = vmul.f32 2.0, %v2923_v18  ;;  %v1041_v63 = vpop.f32.mrb[47].mxu0  ;;  %v4926_v42 = vmax.f32 %v4925_v35, 0.0  ;;  %v4927_v5 = vld [vmem:[#allocation11_spill] sm:$0xff] }
 0x4d9   :  { %v1081_v16 = vsub.f32 %v1065_v1, %v4923_v8  ;;  %v1066_v25 = vmul.f32 2.0, %v1041_v63  ;;  %2936 = vmatprep.mubr.msk.bf16.mxu1 %vm95_vm0, %v1140_v2  ;;  %v1101_v43 = vmul.f32 %v3921_v26, %v4927_v5  ;;  %v4929_v8 = vmax.f32 %v4928_v4, 0.0 }
 0x4da   :  { %v4020_v3 = vadd.f32 %v1100_v57, %v1083_v46  ;;  %v1084_v62 = vsub.f32 %v1068_v54, %v4926_v42  ;;  %2937 = vmatmul.mubr.msk.bf16.gmra.mrb[40].mxu1 %vm95_vm0, %v1141_v55  ;;  %v1099_v63 = vmul.f32 %v3921_v26, %v4930_v15  ;;  %v4049_v26 = vstv %s1118_s21 }
 0x4db   :  { %v4027_v18 = vadd.f32 %v1098_v11, %v1081_v16  ;;  %v1082_v1 = vsub.f32 %v1066_v25, %v4929_v8  ;;  %v3104_v25 = vld [vmem:[%s4831_s3 + $0x40] sm:$0xff]   ;;  %v3105_v16 = vld [vmem:[%s4831_s3 + $0x48] sm:$0xff]   ;;  %v4051_v55 = vstv %s2597_s20  ;;  %v1122_v54 = vmul.f32 %v4049_v26, %v3931_v28 }
 0x4dc   :  { %v4033_v51 = vadd.f32 %v1101_v43, %v1084_v62  ;;  %2976 = vmatprep.subr.bf16.mxu1 %v3104_v25  ;;  %v1120_v62 = vmul.f32 %v4049_v26, %v3937_v30 }
 0x4dd   :  { %v4035_v2 = vadd.f32 %v1099_v63, %v1082_v1  ;;  %2977 = vmatpush3.bf16.msra.mxu1 %v3104_v25  ;;  %v4062_v1 = vld [vmem:[%s4832_s4 + $0x3] ss:$0 sm:$0xff]  ;;  %v1123_v63 = vmul.f32 %v4049_v26, %v3943_v60  ;;  %v1121_v25 = vmul.f32 %v4049_v26, %v3945_v0  ;;  %v1126_v0 = vmul.f32 %v4049_v26, %v3960_v32 }
 0x4de   :  { %v1143_v42 = vpack.c.bf16 %v4033_v51, %v4020_v3  ;;  %2978 = vmatprep.subr.bf16.mxu1 %v3105_v16 }
 0x4df   :  { %v1142_v46 = vpack.c.bf16 %v4035_v2, %v4027_v18 }
 0x4e1   :  { %2940 = vmatprep.mubr.msk.bf16.mxu1 %vm95_vm0, %v1142_v46  ;;  %2979 = vmatpush3.bf16.msra.mxu1 %v3105_v16 }
 0x4e2   :  { %2941 = vmatmul.mubr.msk.bf16.gmra.mrb[44].mxu1 %vm95_vm0, %v1143_v42 }
 0x59d   :  { %v2930_v57 = vpop.f32.mrb[32].mxu1 }
 0x59e   :  { %v1285_v11 = vmul.f32 %v2930_v57, %v4051_v55  ;;  %v1219_v35 = vpop.f32.mrb[33].mxu1 }
 0x59f   :  { %v1283_v43 = vmul.f32 %v4051_v55, %v1219_v35  ;;  %v2931_v4 = vpop.f32.mrb[34].mxu1 }
 0x5a0   :  { %v1301_v8 = vadd.f32 %v1285_v11, %v1122_v54  ;;  %v1286_v28 = vmul.f32 %v2931_v4, %v4051_v55  ;;  %v1222_v42 = vpop.f32.mrb[35].mxu1  ;;  %v1124_v4 = vmul.f32 %v4049_v26, %v3967_v47 }
 0x5a1   :  { %v1299_v46 = vadd.f32 %v1283_v43, %v1120_v62  ;;  %v1284_v30 = vmul.f32 %v4051_v55, %v1222_v42 }
 0x5a2   :  { %v1302_v16 = vadd.f32 %v1286_v28, %v1123_v63  ;;  %v4077_v35 = vadd.f32 %v4062_v1, %v1301_v8 }
 0x5a3   :  { %v4071_v57 = vadd.f32 %v4062_v1, %v1299_v46  ;;  %v1300_v54 = vadd.f32 %v1284_v30, %v1121_v25 }
 0x5a4   :  { %v4074_v11 = vadd.f32 %v4062_v1, %v1302_v16  ;;  %v1127_v16 = vmul.f32 %v4049_v26, %v3973_v20 }
 0x5a5   :  { %v4080_v60 = vadd.f32 %v4062_v1, %v1300_v54  ;;  %v2934_v62 = vpop.f32.mrb[36].mxu1  ;;  %v1125_v54 = vmul.f32 %v4049_v26, %v3975_v48  ;;  %v4931_v8 = vmax.f32 %v4071_v57, 0.0 }
 0x5a6   :  { %v1289_v43 = vmul.f32 %v2934_v62, %v4051_v55  ;;  %v1235_v63 = vpop.f32.mrb[37].mxu1  ;;  %v4875_v62 = vmax.f32 %v4077_v35, 0.0  ;;  %v4933_v48 = vmax.f32 %v4074_v11, 0.0 }
 0x5a7   :  { %v1287_v46 = vmul.f32 %v4051_v55, %v1235_v63  ;;  %v2935_v25 = vpop.f32.mrb[38].mxu1  ;;  %v4932_v63 = vmax.f32 %v4080_v60, 0.0 }
 0x5a8   :  { %v1305_v30 = vadd.f32 %v1289_v43, %v1126_v0  ;;  %v1290_v32 = vmul.f32 %v2935_v25, %v4051_v55  ;;  %v1238_v47 = vpop.f32.mrb[39].mxu1  ;;  %v1358_v25 = vpack.c.bf16 %v4933_v48, %v4875_v62  ;;  %v1131_v48 = vmul.f32 %v4049_v26, %v4003_v29 }
 0x5a9   :  { %v1303_v28 = vadd.f32 %v1287_v46, %v1124_v4  ;;  %v1288_v42 = vmul.f32 %v4051_v55, %v1238_v47  ;;  %v1357_v15 = vpack.c.bf16 %v4932_v63, %v4931_v8 }
 0x5aa   :  { %v1306_v0 = vadd.f32 %v1290_v32, %v1127_v16  ;;  %v4113_v46 = vadd.f32 %v4062_v1, %v1305_v30  ;;  %v1128_v32 = vmul.f32 %v4049_v26, %v3997_v13 }
 0x5ab   :  { %v4103_v43 = vadd.f32 %v4062_v1, %v1303_v28  ;;  %v1304_v20 = vadd.f32 %v1288_v42, %v1125_v54  ;;  %2944 = vmatprep.subr.bf16.mxu0 %v1357_v15  ;;  %v1130_v28 = vmul.f32 %v4049_v26, %v3990_v6 }
 0x5ac   :  { %v4110_v4 = vadd.f32 %v4062_v1, %v1306_v0  ;;  %2945 = vmatpush3.bf16.msra.mxu0 %v1357_v15  ;;  %v4876_v62 = vmax.f32 %v4113_v46, 0.0 }
 0x5ad   :  { %v4116_v8 = vadd.f32 %v4062_v1, %v1304_v20  ;;  %v2938_v16 = vpop.f32.mrb[40].mxu1  ;;  %2946 = vmatprep.subr.bf16.mxu0 %v1358_v25  ;;  %v4935_v30 = vmax.f32 %v4103_v43, 0.0 }
 0x5ae   :  { %v1293_v42 = vmul.f32 %v2938_v16, %v4051_v55  ;;  %v1251_v54 = vpop.f32.mrb[41].mxu1  ;;  %v1129_v16 = vmul.f32 %v4049_v26, %v4005_v19  ;;  %v4937_v19 = vmax.f32 %v4110_v4, 0.0 }
 0x5af   :  { %4934 = vst [vmem:[#allocation15_spill] sm:$0xff] %v4116_v8  ;;  %v1291_v63 = vmul.f32 %v4051_v55, %v1251_v54  ;;  %v2939_v0 = vpop.f32.mrb[42].mxu1  ;;  %v4936_v54 = vmax.f32 %v4116_v8, 0.0 }
 0x5b0   :  { %v1309_v20 = vadd.f32 %v1293_v42, %v1130_v28  ;;  %v1294_v6 = vmul.f32 %v2939_v0, %v4051_v55  ;;  %v1254_v13 = vpop.f32.mrb[43].mxu1  ;;  %2947 = vmatpush3.bf16.msra.mxu0 %v1358_v25  ;;  %v1360_v25 = vpack.c.bf16 %v4937_v19, %v4876_v62  ;;  %v1135_v19 = vmul.f32 %v4049_v26, %v4033_v51 }
 0x5b1   :  { %v1307_v47 = vadd.f32 %v1291_v63, %v1128_v32  ;;  %v1292_v15 = vmul.f32 %v4051_v55, %v1254_v13  ;;  %v1359_v28 = vpack.c.bf16 %v4936_v54, %v4935_v30 }
 0x5b2   :  { %v1310_v42 = vadd.f32 %v1294_v6, %v1131_v48  ;;  %v4149_v63 = vadd.f32 %v4062_v1, %v1309_v20  ;;  %v1132_v6 = vmul.f32 %v4049_v26, %v4027_v18 }
 0x5b3   :  { %v4139_v29 = vadd.f32 %v4062_v1, %v1307_v47  ;;  %v1308_v0 = vadd.f32 %v1292_v15, %v1129_v16  ;;  %2948 = vmatprep.subr.bf16.mxu0 %v1359_v28  ;;  %v1134_v47 = vmul.f32 %v4049_v26, %v4020_v3 }
 0x5b4   :  { %v4146_v32 = vadd.f32 %v4062_v1, %v1310_v42  ;;  %2949 = vmatpush3.bf16.msra.mxu0 %v1359_v28  ;;  %v4881_v62 = vmax.f32 %v4149_v63, 0.0 }
 0x5b5   :  { %v4152_v30 = vadd.f32 %v4062_v1, %v1308_v0  ;;  %v2942_v48 = vpop.f32.mrb[44].mxu1  ;;  %2950 = vmatprep.subr.bf16.mxu0 %v1360_v25  ;;  %v4938_v20 = vmax.f32 %v4139_v29, 0.0 }
 0x5b6   :  { %v1297_v15 = vmul.f32 %v2942_v48, %v4051_v55  ;;  %v1267_v16 = vpop.f32.mrb[45].mxu1  ;;  %v1133_v48 = vmul.f32 %v4049_v26, %v4035_v2  ;;  %v4940_v2 = vmax.f32 %v4146_v32, 0.0 }
 0x5b7   :  { %v1295_v28 = vmul.f32 %v4051_v55, %v1267_v16  ;;  %v2943_v42 = vpop.f32.mrb[46].mxu1  ;;  %v4939_v16 = vmax.f32 %v4152_v30, 0.0 }
 0x5b8   :  { %v1313_v0 = vadd.f32 %v1297_v15, %v1134_v47  ;;  %v1298_v3 = vmul.f32 %v2943_v42, %v4051_v55  ;;  %v1270_v18 = vpop.f32.mrb[47].mxu1  ;;  %2951 = vmatpush3.bf16.msra.mxu0 %v1360_v25  ;;  %v1362_v26 = vpack.c.bf16 %v4940_v2, %v4881_v62 }
 0x5b9   :  { %v1311_v13 = vadd.f32 %v1295_v28, %v1132_v6  ;;  %v1296_v54 = vmul.f32 %v4051_v55, %v1270_v18  ;;  %v1361_v47 = vpack.c.bf16 %v4939_v16, %v4938_v20 }
 0x5ba   :  { %v1314_v15 = vadd.f32 %v1298_v3, %v1135_v19  ;;  %v4185_v55 = vadd.f32 %v4062_v1, %v1313_v0  ;;  %v3174_v0 = vld [vmem:[#allocation5] sm:$0xff]  }
 0x5bb   :  { %v4175_v51 = vadd.f32 %v4062_v1, %v1311_v13  ;;  %v1312_v42 = vadd.f32 %v1296_v54, %v1133_v48  ;;  %2952 = vmatprep.subr.bf16.mxu0 %v1361_v47  ;;  %v4209_v48 = vstv %s2614_s24 }
 0x5bc   :  { %v4182_v25 = vadd.f32 %v4062_v1, %v1314_v15  ;;  %2953 = vmatpush3.bf16.msra.mxu0 %v1361_v47  ;;  %v4880_v28 = vmax.f32 %v4185_v55, 0.0 }
 0x5bd   :  { %v4188_v6 = vadd.f32 %v4062_v1, %v1312_v42  ;;  %2954 = vmatprep.subr.bf16.mxu0 %v1362_v26  ;;  %v4879_v13 = vmax.f32 %v4175_v51, 0.0  ;;  %v1495_v42 = vmul.f32 %v4209_v48, %v3347_v37 }
 0x5be   :  { %v4878_v54 = vmax.f32 %v4182_v25, 0.0 }
 0x5bf   :  { %4941 = vst [vmem:[#allocation13_spill] sm:$0xff] %v4188_v6  ;;  %v4877_v20 = vmax.f32 %v4188_v6, 0.0 }
 0x5c0   :  { %2955 = vmatpush3.bf16.msra.mxu0 %v1362_v26  ;;  %v1364_v1 = vpack.c.bf16 %v4878_v54, %v4880_v28 }
 0x5c1   :  { %v1363_v19 = vpack.c.bf16 %v4877_v20, %v4879_v13  ;;  %v4960_v20 = vld [vmem:[#allocation10_spill] sm:$0xff] }
 0x5c3   :  { %2956 = vmatprep.subr.bf16.mxu0 %v1363_v19 }
 0x5c4   :  { %2957 = vmatpush3.bf16.msra.mxu0 %v1363_v19  ;;  %v4944_v19 = vmax.f32 %v3785_v31, 0.0 }
 0x5c5   :  { %2958 = vmatprep.subr.bf16.mxu0 %v1364_v1 }
 0x5c8   :  { %2959 = vmatpush3.bf16.msra.mxu0 %v1364_v1 }
 0x5cb   :  { %2961 = vmatmul.mubr.bf16.vlgmr.msra.gmra.mrb[48].mxu0 %v3642_v23 }
 0x5cc   :  { %2964 = vmatprep.mubr.bf16.mxu0 %v3644_v24 }
 0x5d3   :  { %2965 = vmatmul.mubr.bf16.gmra.mrb[52].mxu0 %v3648_v38  ;;  %v4942_v38 = vmax.f32 %v3788_v50, 0.0  ;;  %v1498_v50 = vmul.f32 %v4209_v48, %v3352_v40 }
 0x5d4   :  { %2968 = vmatprep.mubr.bf16.mxu0 %v3650_v14  ;;  %v1497_v14 = vmul.f32 %v4209_v48, %v3344_v34 }
 0x5db   :  { %2969 = vmatmul.mubr.bf16.gmra.mrb[56].mxu0 %v3654_v33 }
 0x5dc   :  { %2972 = vmatprep.mubr.bf16.mxu0 %v3656_v44 }
 0x5e3   :  { %2973 = vmatmul.mubr.bf16.gmra.mrb[60].mxu0 %v3660_v36  ;;  %v4943_v36 = vmax.f32 %v3782_v27, 0.0  ;;  %v1496_v27 = vmul.f32 %v4209_v48, %v3354_v41 }
 0x5e4   :  { %3012 = vmatprep.mubr.bf16.mxu0 %v3174_v0 }
 0x69e   :  { %v2962_v3 = vpop.f32.mrb[48].mxu0 }
 0x69f   :  { %v1464_v18 = vmul.f32 2.0, %v2962_v3  ;;  %v1399_v23 = vpop.f32.mrb[49].mxu0  ;;  %v4945_v3 = vmax.f32 %v3791_v45, 0.0  ;;  %v4946_v45 = vmax.f32 %v3824_v39, 0.0 }
 0x6a0   :  { %v1462_v16 = vmul.f32 2.0, %v1399_v23  ;;  %v2963_v24 = vpop.f32.mrb[50].mxu0 }
 0x6a1   :  { %v1480_v47 = vsub.f32 %v1464_v18, %v4942_v38  ;;  %v1465_v33 = vmul.f32 2.0, %v2963_v24  ;;  %v1402_v44 = vpop.f32.mrb[51].mxu0 }
 0x6a2   :  { %v1478_v15 = vsub.f32 %v1462_v16, %v4943_v36  ;;  %v1463_v2 = vmul.f32 2.0, %v1402_v44 }
 0x6a3   :  { %v4219_v26 = vadd.f32 %v1497_v14, %v1480_v47  ;;  %v1481_v1 = vsub.f32 %v1465_v33, %v4944_v19  ;;  %v4947_v19 = vmax.f32 %v3814_v17, 0.0  ;;  %v4949_v17 = vmax.f32 %v3827_v61, 0.0 }
 0x6a4   :  { %v4225_v0 = vadd.f32 %v1495_v42, %v1478_v15  ;;  %v1479_v18 = vsub.f32 %v1463_v2, %v4945_v3  ;;  %v1501_v15 = vmul.f32 %v4209_v48, %v3378_v53  ;;  %v4950_v61 = vmax.f32 %v3860_v49, 0.0 }
 0x6a5   :  { %v4231_v23 = vadd.f32 %v1498_v50, %v1481_v1  ;;  %v1499_v50 = vmul.f32 %v4209_v48, %v3381_v56 }
 0x6a6   :  { %v4233_v16 = vadd.f32 %v1496_v27, %v1479_v18  ;;  %v2966_v24 = vpop.f32.mrb[52].mxu0  ;;  %v4948_v27 = vmax.f32 %v3821_v21, 0.0 }
 0x6a7   :  { %v1546_v31 = vpack.c.bf16 %v4231_v23, %v4219_v26  ;;  %v1468_v38 = vmul.f32 2.0, %v2966_v24  ;;  %v1415_v47 = vpop.f32.mrb[53].mxu0  ;;  %v1502_v24 = vmul.f32 %v4209_v48, %v3385_v58 }
 0x6a8   :  { %v1545_v14 = vpack.c.bf16 %v4233_v16, %v4225_v0  ;;  %v1466_v33 = vmul.f32 2.0, %v1415_v47  ;;  %v2967_v44 = vpop.f32.mrb[54].mxu0 }
 0x6a9   :  { %v1484_v36 = vsub.f32 %v1468_v38, %v4946_v45  ;;  %v1469_v42 = vmul.f32 2.0, %v2967_v44  ;;  %v1418_v2 = vpop.f32.mrb[55].mxu0 }
 0x6aa   :  { %v1482_v1 = vsub.f32 %v1466_v33, %v4947_v19  ;;  %v1467_v3 = vmul.f32 2.0, %v1418_v2  ;;  %2980 = vmatprep.mubr.msk.bf16.mxu1 %vm95_vm0, %v1545_v14  ;;  %v1500_v33 = vmul.f32 %v4209_v48, %v3388_v59 }
 0x6ab   :  { %v4248_v18 = vadd.f32 %v1501_v15, %v1484_v36  ;;  %v1485_v39 = vsub.f32 %v1469_v42, %v4948_v27  ;;  %2981 = vmatmul.mubr.msk.bf16.vlgmr.msra.gmra.mrb[48].mxu1 %vm95_vm0, %v1546_v31  ;;  %v4951_v27 = vmax.f32 %v3850_v52, 0.0  ;;  %v4953_v52 = vmax.f32 %v3863_v22, 0.0  ;;  %v4955_v22 = vld [vmem:[#allocation19_spill] sm:$0xff] }
 0x6ac   :  { %v4255_v38 = vadd.f32 %v1499_v50, %v1482_v1  ;;  %v1483_v47 = vsub.f32 %v1467_v3, %v4949_v17  ;;  %v1505_v1 = vmul.f32 %v4209_v48, %v3412_v7 }
 0x6ad   :  { %v4261_v44 = vadd.f32 %v1502_v24, %v1485_v39  ;;  %v1503_v24 = vmul.f32 %v4209_v48, %v3415_v10 }
 0x6ae   :  { %v4263_v14 = vadd.f32 %v1500_v33, %v1483_v47  ;;  %v2970_v45 = vpop.f32.mrb[56].mxu0  ;;  %v4952_v33 = vmax.f32 %v3857_v9, 0.0 }
 0x6af   :  { %v1548_v21 = vpack.c.bf16 %v4261_v44, %v4248_v18  ;;  %v1472_v36 = vmul.f32 2.0, %v2970_v45  ;;  %v1431_v15 = vpop.f32.mrb[57].mxu0  ;;  %v1506_v45 = vmul.f32 %v4209_v48, %v3419_v12 }
 0x6b0   :  { %v1547_v31 = vpack.c.bf16 %v4263_v14, %v4255_v38  ;;  %v1470_v42 = vmul.f32 2.0, %v1431_v15  ;;  %v2971_v2 = vpop.f32.mrb[58].mxu0 }
 0x6b1   :  { %v1488_v19 = vsub.f32 %v1472_v36, %v4950_v61  ;;  %v1473_v50 = vmul.f32 2.0, %v2971_v2  ;;  %v1434_v3 = vpop.f32.mrb[59].mxu0 }
 0x6b2   :  { %v1486_v39 = vsub.f32 %v1470_v42, %v4951_v27  ;;  %v1471_v17 = vmul.f32 2.0, %v1434_v3  ;;  %2984 = vmatprep.mubr.msk.bf16.mxu1 %vm95_vm0, %v1547_v31  ;;  %v4954_v42 = vld [vmem:[#allocation8_spill] sm:$0xff] }
 0x6b3   :  { %v4278_v47 = vadd.f32 %v1505_v1, %v1488_v19  ;;  %v1489_v49 = vsub.f32 %v1473_v50, %v4952_v33  ;;  %2985 = vmatmul.mubr.msk.bf16.gmra.mrb[52].mxu1 %vm95_vm0, %v1548_v21  ;;  %v1504_v2 = vmul.f32 %v4209_v48, %v4954_v42 }
 0x6b4   :  { %v4285_v36 = vadd.f32 %v1503_v24, %v1486_v39  ;;  %v1487_v15 = vsub.f32 %v1471_v17, %v4953_v52  ;;  %v4956_v39 = vmax.f32 %v4955_v22, 0.0  ;;  %v4957_v17 = vld [vmem:[#allocation9_spill] sm:$0xff] }
 0x6b5   :  { %v4291_v61 = vadd.f32 %v1506_v45, %v1489_v49  ;;  %v1509_v33 = vmul.f32 %v4209_v48, %v4957_v17  ;;  %v4958_v52 = vld [vmem:[#allocation17_spill] sm:$0xff] }
 0x6b6   :  { %v4293_v31 = vadd.f32 %v1504_v2, %v1487_v15  ;;  %v2974_v19 = vpop.f32.mrb[60].mxu0  ;;  %v4959_v15 = vmax.f32 %v4958_v52, 0.0 }
 0x6b7   :  { %v1550_v9 = vpack.c.bf16 %v4291_v61, %v4278_v47  ;;  %v1476_v1 = vmul.f32 2.0, %v2974_v19  ;;  %v1447_v50 = vpop.f32.mrb[61].mxu0  ;;  %v1507_v19 = vmul.f32 %v4209_v48, %v4960_v20 }
 0x6b8   :  { %v1549_v21 = vpack.c.bf16 %v4293_v31, %v4285_v36  ;;  %v1474_v3 = vmul.f32 2.0, %v1447_v50  ;;  %v2975_v27 = vpop.f32.mrb[62].mxu0  ;;  %v4961_v50 = vld [vmem:[#allocation18_spill] sm:$0xff] }
 0x6b9   :  { %v1492_v24 = vsub.f32 %v1476_v1, %v4956_v39  ;;  %v1477_v49 = vmul.f32 2.0, %v2975_v27  ;;  %v1450_v45 = vpop.f32.mrb[63].mxu0  ;;  %v4962_v28 = vmax.f32 %v4961_v50, 0.0  ;;  %v1510_v1 = vmul.f32 %v4209_v48, %v4927_v5  ;;  %v4963_v39 = vld [vmem:[#allocation20_spill] sm:$0xff] }
 0x6ba   :  { %v1490_v2 = vsub.f32 %v1474_v3, %v4959_v15  ;;  %v1475_v54 = vmul.f32 2.0, %v1450_v45  ;;  %2988 = vmatprep.mubr.msk.bf16.mxu1 %vm95_vm0, %v1549_v21  ;;  %v4964_v3 = vmax.f32 %v4963_v39, 0.0  ;;  %v4965_v15 = vld [vmem:[#allocation12_spill] sm:$0xff] }
 0x6bb   :  { %v4308_v13 = vadd.f32 %v1509_v33, %v1492_v24  ;;  %v1493_v22 = vsub.f32 %v1477_v49, %v4962_v28  ;;  %2989 = vmatmul.mubr.msk.bf16.gmra.mrb[56].mxu1 %vm95_vm0, %v1550_v9  ;;  %v1508_v45 = vmul.f32 %v4209_v48, %v4965_v15  ;;  %v3175_v9 = vld [vmem:[#allocation5 + $0x20] sm:$0xff]   ;;  %v4333_v48 = vstv %s2615_s25 }
 0x6bc   :  { %v4315_v27 = vadd.f32 %v1507_v19, %v1490_v2  ;;  %v1491_v52 = vsub.f32 %v1475_v54, %v4964_v3  ;;  %v4331_v54 = vstv %s1527_s1 }
 0x6bd   :  { %v4321_v62 = vadd.f32 %v1510_v1, %v1493_v22  ;;  %v1531_v49 = vmul.f32 %v4331_v54, %v4219_v26  ;;  %v1529_v50 = vmul.f32 %v4331_v54, %v4225_v0  ;;  %v1532_v3 = vmul.f32 %v4331_v54, %v4231_v23  ;;  %v4347_v26 = vld [vmem:[%s4832_s4 + $0x4] ss:$0 sm:$0xff] }
 0x6be   :  { %v4323_v21 = vadd.f32 %v1508_v45, %v1491_v52 }
 0x6bf   :  { %v1552_v28 = vpack.c.bf16 %v4321_v62, %v4308_v13 }
 0x6c0   :  { %v1551_v24 = vpack.c.bf16 %v4323_v21, %v4315_v27 }
 0x6c2   :  { %2992 = vmatprep.mubr.msk.bf16.mxu1 %vm95_vm0, %v1551_v24  ;;  %v1530_v24 = vmul.f32 %v4331_v54, %v4233_v16 }
 0x6c3   :  { %2993 = vmatmul.mubr.msk.bf16.gmra.mrb[60].mxu1 %vm95_vm0, %v1552_v28 }
 0x6c4   :  { %3020 = vmatprep.mubr.bf16.mxu1 %v3175_v9 }
 0x77e   :  { %v2982_v33 = vpop.f32.mrb[48].mxu1 }
 0x77f   :  { %v1694_v2 = vmul.f32 %v2982_v33, %v4333_v48  ;;  %v1628_v19 = vpop.f32.mrb[49].mxu1 }
 0x780   :  { %v1692_v22 = vmul.f32 %v4333_v48, %v1628_v19  ;;  %v2983_v1 = vpop.f32.mrb[50].mxu1 }
 0x781   :  { %v1710_v39 = vadd.f32 %v1694_v2, %v1531_v49  ;;  %v1695_v52 = vmul.f32 %v2983_v1, %v4333_v48  ;;  %v1631_v45 = vpop.f32.mrb[51].mxu1 }
 0x782   :  { %v1708_v28 = vadd.f32 %v1692_v22, %v1529_v50  ;;  %v1693_v0 = vmul.f32 %v4333_v48, %v1631_v45  ;;  %v1535_v50 = vmul.f32 %v4331_v54, %v4248_v18  ;;  %v1534_v18 = vmul.f32 %v4331_v54, %v4263_v14 }
 0x783   :  { %v1711_v9 = vadd.f32 %v1695_v52, %v1532_v3  ;;  %v1734_v49 = vadd.f32 %v4347_v26, %v1710_v39  ;;  %v1533_v3 = vmul.f32 %v4331_v54, %v4255_v38 }
 0x784   :  { %v1709_v33 = vadd.f32 %v1693_v0, %v1530_v24  ;;  %v1732_v2 = vadd.f32 %v4347_v26, %v1708_v28  ;;  %v1536_v28 = vmul.f32 %v4331_v54, %v4261_v44 }
 0x785   :  { %v1735_v23 = vadd.f32 %v4347_v26, %v1711_v9 }
 0x786   :  { %v1733_v19 = vadd.f32 %v4347_v26, %v1709_v33  ;;  %v2986_v1 = vpop.f32.mrb[52].mxu1 }
 0x787   :  { %v1751_v6 = vpack.c.bf16 %v1735_v23, %v1734_v49  ;;  %v1698_v22 = vmul.f32 %v2986_v1, %v4333_v48  ;;  %v1644_v16 = vpop.f32.mrb[53].mxu1 }
 0x788   :  { %v1750_v8 = vpack.c.bf16 %v1733_v19, %v1732_v2  ;;  %v1696_v39 = vmul.f32 %v4333_v48, %v1644_v16  ;;  %v2987_v52 = vpop.f32.mrb[54].mxu1 }
 0x789   :  { %v1714_v45 = vadd.f32 %v1698_v22, %v1535_v50  ;;  %v1699_v24 = vmul.f32 %v2987_v52, %v4333_v48  ;;  %v1647_v0 = vpop.f32.mrb[55].mxu1  ;;  %v1539_v50 = vmul.f32 %v4331_v54, %v4278_v47 }
 0x78a   :  { %v1712_v9 = vadd.f32 %v1696_v39, %v1533_v3  ;;  %v1697_v33 = vmul.f32 %v4333_v48, %v1647_v0  ;;  %2996 = vmatprep.subr.bf16.mxu0 %v1750_v8  ;;  %3068 = vmatprep.subr.bf16.mxu1 %v1750_v8  ;;  %v1537_v3 = vmul.f32 %v4331_v54, %v4285_v36 }
 0x78b   :  { %v1715_v49 = vadd.f32 %v1699_v24, %v1536_v28  ;;  %2997 = vmatpush3.bf16.msra.mxu0 %v1750_v8  ;;  %3076 = vmatpush3.bf16.msra.mxu1 %v1750_v8  ;;  %v1738_v23 = vadd.f32 %v4347_v26, %v1714_v45  ;;  %v1540_v28 = vmul.f32 %v4331_v54, %v4291_v61 }
 0x78c   :  { %v1713_v38 = vadd.f32 %v1697_v33, %v1534_v18  ;;  %2998 = vmatprep.subr.bf16.mxu0 %v1751_v6  ;;  %3069 = vmatprep.subr.bf16.mxu1 %v1751_v6  ;;  %v1736_v2 = vadd.f32 %v4347_v26, %v1712_v9  ;;  %v1538_v9 = vmul.f32 %v4331_v54, %v4293_v31 }
 0x78d   :  { %v1739_v44 = vadd.f32 %v4347_v26, %v1715_v49 }
 0x78e   :  { %v1737_v19 = vadd.f32 %v4347_v26, %v1713_v38  ;;  %v2990_v1 = vpop.f32.mrb[56].mxu1 }
 0x78f   :  { %v1753_v14 = vpack.c.bf16 %v1739_v44, %v1738_v23  ;;  %v1702_v22 = vmul.f32 %v2990_v1, %v4333_v48  ;;  %v1660_v16 = vpop.f32.mrb[57].mxu1  ;;  %2999 = vmatpush3.bf16.msra.mxu0 %v1751_v6  ;;  %3077 = vmatpush3.bf16.msra.mxu1 %v1751_v6  ;;  %v1543_v44 = vmul.f32 %v4331_v54, %v4308_v13 }
 0x790   :  { %v1752_v8 = vpack.c.bf16 %v1737_v19, %v1736_v2  ;;  %v1700_v39 = vmul.f32 %v4333_v48, %v1660_v16  ;;  %v2991_v52 = vpop.f32.mrb[58].mxu1 }
 0x791   :  { %v1718_v45 = vadd.f32 %v1702_v22, %v1539_v50  ;;  %v1703_v24 = vmul.f32 %v2991_v52, %v4333_v48  ;;  %v1663_v0 = vpop.f32.mrb[59].mxu1  ;;  %v1541_v50 = vmul.f32 %v4331_v54, %v4315_v27 }
 0x792   :  { %v1716_v47 = vadd.f32 %v1700_v39, %v1537_v3  ;;  %v1701_v6 = vmul.f32 %v4333_v48, %v1663_v0  ;;  %3000 = vmatprep.subr.bf16.mxu0 %v1752_v8  ;;  %3070 = vmatprep.subr.bf16.mxu1 %v1752_v8  ;;  %v1544_v3 = vmul.f32 %v4331_v54, %v4321_v62 }
 0x793   :  { %v1719_v18 = vadd.f32 %v1703_v24, %v1540_v28  ;;  %3001 = vmatpush3.bf16.msra.mxu0 %v1752_v8  ;;  %3078 = vmatpush3.bf16.msra.mxu1 %v1752_v8  ;;  %v1742_v33 = vadd.f32 %v4347_v26, %v1718_v45  ;;  %v1542_v45 = vmul.f32 %v4331_v54, %v4323_v21  ;;  %v3106_v54 = vld [vmem:[%s4831_s3 + $0x50] sm:$0xff]  }
 0x794   :  { %v1717_v36 = vadd.f32 %v1701_v6, %v1538_v9  ;;  %3002 = vmatprep.subr.bf16.mxu0 %v1753_v14  ;;  %3071 = vmatprep.subr.bf16.mxu1 %v1753_v14  ;;  %v1740_v49 = vadd.f32 %v4347_v26, %v1716_v47  ;;  %v3178_v6 = vld [vmem:[#allocation5 + $0x10] sm:$0xff]  }
 0x795   :  { %v1743_v61 = vadd.f32 %v4347_v26, %v1719_v18  ;;  %v3179_v18 = vld [vmem:[#allocation5 + $0x30] sm:$0xff]  }
 0x796   :  { %v1741_v38 = vadd.f32 %v4347_v26, %v1717_v36  ;;  %v2994_v23 = vpop.f32.mrb[60].mxu1  ;;  %v3180_v36 = vld [vmem:[#allocation5 + $0x18] sm:$0xff]  }
 0x797   :  { %v1755_v31 = vpack.c.bf16 %v1743_v61, %v1742_v33  ;;  %v1706_v2 = vmul.f32 %v2994_v23, %v4333_v48  ;;  %v1676_v19 = vpop.f32.mrb[61].mxu1  ;;  %3003 = vmatpush3.bf16.msra.mxu0 %v1753_v14  ;;  %3079 = vmatpush3.bf16.msra.mxu1 %v1753_v14  ;;  %v3181_v33 = vld [vmem:[#allocation5 + $0x38] sm:$0xff]   ;;  %v3107_v61 = vld [vmem:[%s4831_s3 + $0x58] sm:$0xff]  }
 0x798   :  { %v1754_v1 = vpack.c.bf16 %v1741_v38, %v1740_v49  ;;  %v1704_v22 = vmul.f32 %v4333_v48, %v1676_v19  ;;  %v2995_v16 = vpop.f32.mrb[62].mxu1  ;;  %v3108_v49 = vld [vmem:[%s4831_s3 + $0x60] sm:$0xff]   ;;  %v1887_v38 = vstv %s2632_s8 }
 0x799   :  { %v1722_v8 = vadd.f32 %v1706_v2, %v1543_v44  ;;  %v1707_v39 = vmul.f32 %v2995_v16, %v4333_v48  ;;  %v1679_v52 = vpop.f32.mrb[63].mxu1  ;;  %v1890_v23 = vmul.f32 %v1887_v38, %v3344_v34  ;;  %v1891_v44 = vmul.f32 %v1887_v38, %v3352_v40 }
 0x79a   :  { %v1720_v13 = vadd.f32 %v1704_v22, %v1541_v50  ;;  %v1705_v14 = vmul.f32 %v4333_v48, %v1679_v52  ;;  %3004 = vmatprep.subr.bf16.mxu0 %v1754_v1  ;;  %3072 = vmatprep.subr.bf16.mxu1 %v1754_v1  ;;  %v3176_v48 = vld [vmem:[#allocation5 + $0x8] sm:$0xff]   ;;  %v1889_v2 = vmul.f32 %v1887_v38, %v3354_v41 }
 0x79b   :  { %v1723_v28 = vadd.f32 %v1707_v39, %v1544_v3  ;;  %3005 = vmatpush3.bf16.msra.mxu0 %v1754_v1  ;;  %3080 = vmatpush3.bf16.msra.mxu1 %v1754_v1  ;;  %v1746_v24 = vadd.f32 %v4347_v26, %v1722_v8  ;;  %v1898_v50 = vmul.f32 %v1887_v38, %v3412_v7 }
 0x79c   :  { %v1721_v27 = vadd.f32 %v1705_v14, %v1542_v45  ;;  %3006 = vmatprep.subr.bf16.mxu0 %v1755_v31  ;;  %3073 = vmatprep.subr.bf16.mxu1 %v1755_v31  ;;  %v1744_v0 = vadd.f32 %v4347_v26, %v1720_v13  ;;  %v1896_v22 = vmul.f32 %v1887_v38, %v3415_v10 }
 0x79d   :  { %v1747_v62 = vadd.f32 %v4347_v26, %v1723_v28  ;;  %v1899_v16 = vmul.f32 %v1887_v38, %v3419_v12  ;;  %v1897_v8 = vmul.f32 %v1887_v38, %v4954_v42  ;;  %v1902_v40 = vmul.f32 %v1887_v38, %v4957_v17 }
 0x79e   :  { %v1745_v47 = vadd.f32 %v4347_v26, %v1721_v27  ;;  %v3177_v26 = vld [vmem:[#allocation5 + $0x28] sm:$0xff]   ;;  %v1892_v7 = vmul.f32 %v1887_v38, %v3381_v56  ;;  %v1900_v10 = vmul.f32 %v1887_v38, %v4960_v20  ;;  %v4966_v12 = vmax.f32 %v4077_v35, 0.0 }
 0x79f   :  { %v1757_v9 = vpack.c.bf16 %v1747_v62, %v1746_v24  ;;  %3007 = vmatpush3.bf16.msra.mxu0 %v1755_v31  ;;  %3081 = vmatpush3.bf16.msra.mxu1 %v1755_v31  ;;  %v1888_v31 = vmul.f32 %v1887_v38, %v3347_v37  ;;  %v1894_v37 = vmul.f32 %v1887_v38, %v3378_v53  ;;  %v4967_v42 = vmax.f32 %v4149_v63, 0.0 }
 0x7a0   :  { %v1756_v21 = vpack.c.bf16 %v1745_v47, %v1744_v0  ;;  %v4968_v17 = vmax.f32 %v4071_v57, 0.0  ;;  %v4970_v35 = vmax.f32 %v4074_v11, 0.0  ;;  %v4972_v57 = vmax.f32 %v4080_v60, 0.0 }
 0x7a1   :  { %v1895_v11 = vmul.f32 %v1887_v38, %v3385_v58  ;;  %v1893_v60 = vmul.f32 %v1887_v38, %v3388_v59 }
 0x7a2   :  { %3008 = vmatprep.subr.bf16.mxu0 %v1756_v21  ;;  %3074 = vmatprep.subr.bf16.mxu1 %v1756_v21 }
 0x7a3   :  { %3009 = vmatpush3.bf16.msra.mxu0 %v1756_v21  ;;  %3082 = vmatpush3.bf16.msra.mxu1 %v1756_v21 }
 0x7a4   :  { %3010 = vmatprep.subr.bf16.mxu0 %v1757_v9  ;;  %3075 = vmatprep.subr.bf16.mxu1 %v1757_v9 }
 0x7a7   :  { %3011 = vmatpush3.bf16.msra.mxu0 %v1757_v9  ;;  %3083 = vmatpush3.bf16.msra.mxu1 %v1757_v9  ;;  %v4969_v9 = vmax.f32 %v4139_v29, 0.0 }
 0x7a8   :  { %3028 = vmatprep.subr.bf16.mxu1 %v3106_v54  ;;  %3048 = vmatprep.subr.bf16.mxu0 %v3108_v49 }
 0x7aa   :  { %3013 = vmatmul.mubr.bf16.vlgmr.msra.gmra.mrb[64].mxu0 %v3176_v48  ;;  %3021 = vmatmul.mubr.bf16.vlgmr.msra.gmra.mrb[64].mxu1 %v3177_v26  ;;  %v4971_v26 = vmax.f32 %v4146_v32, 0.0 }
 0x7ab   :  { %3016 = vmatprep.mubr.bf16.mxu0 %v3178_v6  ;;  %3024 = vmatprep.mubr.bf16.mxu1 %v3179_v18 }
 0x7ac   :  { %3029 = vmatpush3.bf16.msra.mxu1 %v3106_v54  ;;  %3049 = vmatpush3.bf16.msra.mxu0 %v3108_v49 }
 0x7ad   :  { %3030 = vmatprep.subr.bf16.mxu1 %v3107_v61 }
 0x7b0   :  { %3031 = vmatpush3.bf16.msra.mxu1 %v3107_v61 }
 0x7b2   :  { %3017 = vmatmul.mubr.bf16.gmra.mrb[68].mxu0 %v3180_v36  ;;  %3025 = vmatmul.mubr.bf16.gmra.mrb[68].mxu1 %v3181_v33  ;;  %v4973_v33 = vmax.f32 %v4152_v30, 0.0 }
 0x87d   :  { %v3014_v19 = vpop.f32.mrb[64].mxu0  ;;  %v3022_v1 = vpop.f32.mrb[64].mxu1 }
 0x87e   :  { %v1857_v3 = vmul.f32 2.0, %v3014_v19  ;;  %v1865_v39 = vmul.f32 2.0, %v3022_v1  ;;  %v1792_v52 = vpop.f32.mrb[65].mxu0  ;;  %v1824_v34 = vpop.f32.mrb[65].mxu1  ;;  %v1903_v19 = vmul.f32 %v1887_v38, %v4927_v5 }
 0x87f   :  { %v1855_v13 = vmul.f32 2.0, %v1792_v52  ;;  %v1863_v41 = vmul.f32 2.0, %v1824_v34  ;;  %v3015_v45 = vpop.f32.mrb[66].mxu0  ;;  %v3023_v14 = vpop.f32.mrb[66].mxu1 }
 0x880   :  { %v1873_v28 = vsub.f32 %v1857_v3, %v4966_v12  ;;  %v1881_v27 = vsub.f32 %v1865_v39, %v4967_v42  ;;  %v1858_v24 = vmul.f32 2.0, %v3015_v45  ;;  %v1866_v62 = vmul.f32 2.0, %v3023_v14  ;;  %v1795_v0 = vpop.f32.mrb[67].mxu0  ;;  %v1827_v53 = vpop.f32.mrb[67].mxu1 }
 0x881   :  { %v1871_v47 = vsub.f32 %v1855_v13, %v4968_v17  ;;  %v1879_v21 = vsub.f32 %v1863_v41, %v4969_v9  ;;  %v1856_v54 = vmul.f32 2.0, %v1795_v0  ;;  %v1864_v56 = vmul.f32 2.0, %v1827_v53 }
 0x882   :  { %v4433_v48 = vadd.f32 %v1890_v23, %v1873_v28  ;;  %v4435_v20 = vadd.f32 %v1898_v50, %v1881_v27  ;;  %v1874_v63 = vsub.f32 %v1858_v24, %v4970_v35  ;;  %v1882_v6 = vsub.f32 %v1866_v62, %v4971_v26 }
 0x883   :  { %v4441_v18 = vadd.f32 %v1888_v31, %v1871_v47  ;;  %v4443_v36 = vadd.f32 %v1896_v22, %v1879_v21  ;;  %v1872_v29 = vsub.f32 %v1856_v54, %v4972_v57  ;;  %v1880_v61 = vsub.f32 %v1864_v56, %v4973_v33 }
 0x884   :  { %v4449_v49 = vadd.f32 %v1891_v44, %v1874_v63  ;;  %v4451_v23 = vadd.f32 %v1899_v16, %v1882_v6  ;;  %v1901_v22 = vmul.f32 %v1887_v38, %v4965_v15  ;;  %v4974_v38 = vmax.f32 %v4113_v46, 0.0  ;;  %v4982_v63 = vld [vmem:[#allocation13_spill] sm:$0xff] }
 0x885   :  { %v4455_v32 = vadd.f32 %v1889_v2, %v1872_v29  ;;  %v4457_v31 = vadd.f32 %v1897_v8, %v1880_v61  ;;  %v3018_v1 = vpop.f32.mrb[68].mxu0  ;;  %v3026_v50 = vpop.f32.mrb[68].mxu1  ;;  %v4975_v13 = vmax.f32 %v4185_v55, 0.0  ;;  %v4976_v42 = vmax.f32 %v4103_v43, 0.0 }
 0x886   :  { %v1939_v30 = vpack.c.bf16 %v4449_v49, %v4433_v48  ;;  %v1943_v44 = vpack.c.bf16 %v4451_v23, %v4435_v20  ;;  %v1861_v16 = vmul.f32 2.0, %v3018_v1  ;;  %v1869_v58 = vmul.f32 2.0, %v3026_v50  ;;  %v1808_v3 = vpop.f32.mrb[69].mxu0  ;;  %v1840_v5 = vpop.f32.mrb[69].mxu1 }
 0x887   :  { %v1938_v2 = vpack.c.bf16 %v4455_v32, %v4441_v18  ;;  %v1942_v8 = vpack.c.bf16 %v4457_v31, %v4443_v36  ;;  %v1859_v39 = vmul.f32 2.0, %v1808_v3  ;;  %v1867_v59 = vmul.f32 2.0, %v1840_v5  ;;  %v3019_v52 = vpop.f32.mrb[70].mxu0  ;;  %v3027_v15 = vpop.f32.mrb[70].mxu1 }
 0x888   :  { %v1877_v34 = vsub.f32 %v1861_v16, %v4974_v38  ;;  %v1885_v41 = vsub.f32 %v1869_v58, %v4975_v13  ;;  %v1862_v45 = vmul.f32 2.0, %v3019_v52  ;;  %v1870_v14 = vmul.f32 2.0, %v3027_v15  ;;  %v1811_v12 = vpop.f32.mrb[71].mxu0  ;;  %v1843_v28 = vpop.f32.mrb[71].mxu1 }
 0x889   :  { %v1875_v27 = vsub.f32 %v1859_v39, %v4976_v42  ;;  %v4977_v24 = vmax.f32 %v4175_v51, 0.0  ;;  %v1860_v0 = vmul.f32 2.0, %v1811_v12  ;;  %v1868_v53 = vmul.f32 2.0, %v1843_v28  ;;  %3032 = vmatprep.mubr.msk.bf16.mxu1 %vm95_vm0, %v1938_v2  ;;  %v4980_v51 = vld [vmem:[#allocation15_spill] sm:$0xff] }
 0x88a   :  { %v1910_v17 = vadd.f32 %v1894_v37, %v1877_v34  ;;  %v4478_v46 = vadd.f32 %v1902_v40, %v1885_v41  ;;  %v4978_v55 = vmax.f32 %v4110_v4, 0.0  ;;  %v4979_v9 = vmax.f32 %v4182_v25, 0.0  ;;  %3033 = vmatmul.mubr.msk.bf16.vlgmr.msra.gmra.mrb[72].mxu1 %vm95_vm0, %v1939_v30 }
 0x88b   :  { %v1883_v62 = vsub.f32 %v1867_v59, %v4977_v24  ;;  %v1908_v43 = vadd.f32 %v1892_v7, %v1875_v27  ;;  %v4981_v56 = vmax.f32 %v4980_v51, 0.0  ;;  %v4983_v26 = vmax.f32 %v4982_v63, 0.0 }
 0x88c   :  { %v1878_v47 = vsub.f32 %v1862_v45, %v4978_v55  ;;  %v1886_v21 = vsub.f32 %v1870_v14, %v4979_v9  ;;  %v4508_v61 = vstv %s1920_s12 }
 0x88d   :  { %v4485_v54 = vadd.f32 %v1900_v10, %v1883_v62  ;;  %v1876_v35 = vsub.f32 %v1860_v0, %v4981_v56  ;;  %v1884_v6 = vsub.f32 %v1868_v53, %v4983_v26  ;;  %v3109_v10 = vld [vmem:[%s4831_s3 + $0x68] sm:$0xff]   ;;  %v1924_v1 = vmul.f32 %v4508_v61, %v4433_v48 }
 0x88e   :  { %v1911_v37 = vadd.f32 %v1895_v11, %v1878_v47  ;;  %v4491_v40 = vadd.f32 %v1903_v19, %v1886_v21  ;;  %3050 = vmatprep.subr.bf16.mxu0 %v3109_v10  ;;  %v4510_v11 = vstv %s2633_s11  ;;  %v1922_v30 = vmul.f32 %v4508_v61, %v4441_v18 }
 0x88f   :  { %v1909_v57 = vadd.f32 %v1893_v60, %v1876_v35  ;;  %v4493_v4 = vadd.f32 %v1901_v22, %v1884_v6  ;;  %3051 = vmatpush3.bf16.msra.mxu0 %v3109_v10  ;;  %v4518_v22 = vld [vmem:[%s4832_s4 + $0x5] ss:$0 sm:$0xff]  ;;  %v1925_v3 = vmul.f32 %v4508_v61, %v4449_v49  ;;  %v1928_v45 = vmul.f32 %v4508_v61, %v1910_v17 }
 0x890   :  { %v1941_v29 = vpack.c.bf16 %v1911_v37, %v1910_v17  ;;  %v1945_v25 = vpack.c.bf16 %v4491_v40, %v4478_v46  ;;  %v1926_v42 = vmul.f32 %v4508_v61, %v1908_v43  ;;  %v1929_v53 = vmul.f32 %v4508_v61, %v1911_v37 }
 0x891   :  { %v1940_v33 = vpack.c.bf16 %v1909_v57, %v1908_v43  ;;  %v1944_v7 = vpack.c.bf16 %v4493_v4, %v4485_v54  ;;  %v1927_v17 = vmul.f32 %v4508_v61, %v1909_v57  ;;  %v1932_v57 = vmul.f32 %v4508_v61, %v4435_v20 }
 0x893   :  { %3036 = vmatprep.mubr.msk.bf16.mxu1 %vm95_vm0, %v1940_v33 }
 0x894   :  { %3037 = vmatmul.mubr.msk.bf16.gmra.mrb[76].mxu1 %vm95_vm0, %v1941_v29 }
 0x895   :  { %3040 = vmatprep.mubr.msk.bf16.mxu1 %vm95_vm0, %v1942_v8  ;;  %v1923_v8 = vmul.f32 %v4508_v61, %v4455_v32 }
 0x89c   :  { %3041 = vmatmul.mubr.msk.bf16.gmra.mrb[80].mxu1 %vm95_vm0, %v1943_v44 }
 0x89d   :  { %3044 = vmatprep.mubr.msk.bf16.mxu1 %vm95_vm0, %v1944_v7 }
 0x8a4   :  { %3045 = vmatmul.mubr.msk.bf16.gmra.mrb[84].mxu1 %vm95_vm0, %v1945_v25 }
 0x95d   :  { %v3034_v19 = vpop.f32.mrb[72].mxu1 }
 0x95e   :  { %v2087_v50 = vmul.f32 %v3034_v19, %v4510_v11  ;;  %v2021_v60 = vpop.f32.mrb[73].mxu1 }
 0x95f   :  { %v2085_v44 = vmul.f32 %v4510_v11, %v2021_v60  ;;  %v3035_v16 = vpop.f32.mrb[74].mxu1 }
 0x960   :  { %v2103_v58 = vadd.f32 %v2087_v50, %v1924_v1  ;;  %v2088_v48 = vmul.f32 %v3035_v16, %v4510_v11  ;;  %v2024_v5 = vpop.f32.mrb[75].mxu1  ;;  %v1930_v1 = vmul.f32 %v4508_v61, %v4443_v36  ;;  %v1933_v16 = vmul.f32 %v4508_v61, %v4451_v23 }
 0x961   :  { %v2101_v2 = vadd.f32 %v2085_v44, %v1922_v30  ;;  %v2086_v39 = vmul.f32 %v4510_v11, %v2024_v5  ;;  %v1931_v5 = vmul.f32 %v4508_v61, %v4457_v31  ;;  %v1936_v31 = vmul.f32 %v4508_v61, %v4478_v46 }
 0x962   :  { %v2127_v59 = vadd.f32 %v4518_v22, %v2103_v58  ;;  %v2104_v52 = vadd.f32 %v2088_v48, %v1925_v3 }
 0x963   :  { %v2125_v18 = vadd.f32 %v4518_v22, %v2101_v2  ;;  %v2102_v15 = vadd.f32 %v2086_v39, %v1923_v8 }
 0x964   :  { %v2128_v38 = vadd.f32 %v4518_v22, %v2104_v52  ;;  %v2143_v13 = vmax.f32 %v2127_v59, 0.0 }
 0x965   :  { %v2126_v34 = vadd.f32 %v4518_v22, %v2102_v15  ;;  %v2141_v12 = vmax.f32 %v2125_v18, 0.0 }
 0x966   :  { %v2144_v41 = vmax.f32 %v2128_v38, 0.0 }
 0x967   :  { %v3038_v49 = vpop.f32.mrb[76].mxu1  ;;  %v2142_v28 = vmax.f32 %v2126_v34, 0.0 }
 0x968   :  { %v2091_v14 = vmul.f32 %v3038_v49, %v4510_v11  ;;  %v2037_v32 = vpop.f32.mrb[77].mxu1  ;;  %v2158_v62 = vpack.c.bf16 %v2144_v41, %v2143_v13 }
 0x969   :  { %v2089_v27 = vmul.f32 %v4510_v11, %v2037_v32  ;;  %v3039_v24 = vpop.f32.mrb[78].mxu1  ;;  %v2157_v9 = vpack.c.bf16 %v2142_v28, %v2141_v12 }
 0x96a   :  { %v2107_v0 = vadd.f32 %v2091_v14, %v1928_v45  ;;  %v2092_v55 = vmul.f32 %v3039_v24, %v4510_v11  ;;  %v2040_v47 = vpop.f32.mrb[79].mxu1  ;;  %v1934_v45 = vmul.f32 %v4508_v61, %v4485_v54 }
 0x96b   :  { %v2105_v21 = vadd.f32 %v2089_v27, %v1926_v42  ;;  %v2090_v51 = vmul.f32 %v4510_v11, %v2040_v47  ;;  %3052 = vmatprep.mubr.msk.bf16.mxu0 %vm95_vm0, %v2157_v9  ;;  %v1937_v42 = vmul.f32 %v4508_v61, %v4491_v40 }
 0x96c   :  { %v2131_v56 = vadd.f32 %v4518_v22, %v2107_v0  ;;  %v2108_v35 = vadd.f32 %v2092_v55, %v1929_v53  ;;  %3053 = vmatmul.mubr.msk.bf16.vlgmr.msra.gmra.mrb[72].mxu0 %vm95_vm0, %v2158_v62  ;;  %v1935_v0 = vmul.f32 %v4508_v61, %v4493_v4 }
 0x96d   :  { %v2129_v43 = vadd.f32 %v4518_v22, %v2105_v21  ;;  %v2106_v63 = vadd.f32 %v2090_v51, %v1927_v17 }
 0x96e   :  { %v2132_v26 = vadd.f32 %v4518_v22, %v2108_v35  ;;  %v2147_v29 = vmax.f32 %v2131_v56, 0.0  ;;  %v2655_v35 = vld [vmem:[%s4832_s4 + $0x6] ss:$0 sm:$0xff] }
 0x96f   :  { %v2130_v6 = vadd.f32 %v4518_v22, %v2106_v63  ;;  %v3042_v37 = vpop.f32.mrb[80].mxu1  ;;  %v2145_v10 = vmax.f32 %v2129_v43, 0.0 }
 0x970   :  { %v2148_v25 = vmax.f32 %v2132_v26, 0.0  ;;  %v2095_v33 = vmul.f32 %v3042_v37, %v4510_v11  ;;  %v2053_v7 = vpop.f32.mrb[81].mxu1 }
 0x971   :  { %v2146_v19 = vmax.f32 %v2130_v6, 0.0  ;;  %v2093_v50 = vmul.f32 %v4510_v11, %v2053_v7  ;;  %v3043_v60 = vpop.f32.mrb[82].mxu1 }
 0x972   :  { %v2160_v30 = vpack.c.bf16 %v2148_v25, %v2147_v29  ;;  %v2111_v44 = vadd.f32 %v2095_v33, %v1932_v57  ;;  %v2096_v58 = vmul.f32 %v3043_v60, %v4510_v11  ;;  %v2056_v3 = vpop.f32.mrb[83].mxu1 }
 0x973   :  { %v2159_v20 = vpack.c.bf16 %v2146_v19, %v2145_v10  ;;  %v2109_v48 = vadd.f32 %v2093_v50, %v1930_v1  ;;  %v2094_v2 = vmul.f32 %v4510_v11, %v2056_v3 }
 0x974   :  { %v2135_v36 = vadd.f32 %v4518_v22, %v2111_v44  ;;  %v2112_v8 = vadd.f32 %v2096_v58, %v1933_v16 }
 0x975   :  { %v2133_v39 = vadd.f32 %v4518_v22, %v2109_v48  ;;  %v2110_v59 = vadd.f32 %v2094_v2, %v1931_v5  ;;  %3056 = vmatprep.mubr.msk.bf16.mxu0 %vm95_vm0, %v2159_v20 }
 0x976   :  { %v2136_v23 = vadd.f32 %v4518_v22, %v2112_v8  ;;  %3057 = vmatmul.mubr.msk.bf16.gmra.mrb[76].mxu0 %vm95_vm0, %v2160_v30  ;;  %v2151_v15 = vmax.f32 %v2135_v36, 0.0 }
 0x977   :  { %v2134_v52 = vadd.f32 %v4518_v22, %v2110_v59  ;;  %v3046_v18 = vpop.f32.mrb[84].mxu1  ;;  %v2149_v13 = vmax.f32 %v2133_v39, 0.0 }
 0x978   :  { %v2152_v38 = vmax.f32 %v2136_v23, 0.0  ;;  %v2099_v34 = vmul.f32 %v3046_v18, %v4510_v11  ;;  %v2069_v49 = vpop.f32.mrb[85].mxu1 }
 0x979   :  { %v2150_v41 = vmax.f32 %v2134_v52, 0.0  ;;  %v2097_v14 = vmul.f32 %v4510_v11, %v2069_v49  ;;  %v3047_v32 = vpop.f32.mrb[86].mxu1 }
 0x97a   :  { %v2162_v12 = vpack.c.bf16 %v2152_v38, %v2151_v15  ;;  %v2115_v28 = vadd.f32 %v2099_v34, %v1936_v31  ;;  %v2100_v27 = vmul.f32 %v3047_v32, %v4510_v11  ;;  %v2072_v24 = vpop.f32.mrb[87].mxu1 }
 0x97b   :  { %v2161_v46 = vpack.c.bf16 %v2150_v41, %v2149_v13  ;;  %v2113_v62 = vadd.f32 %v2097_v14, %v1934_v45  ;;  %v2098_v53 = vmul.f32 %v4510_v11, %v2072_v24 }
 0x97c   :  { %v2139_v54 = vadd.f32 %v4518_v22, %v2115_v28  ;;  %v2116_v55 = vadd.f32 %v2100_v27, %v1937_v42 }
 0x97d   :  { %v2137_v47 = vadd.f32 %v4518_v22, %v2113_v62  ;;  %v2114_v9 = vadd.f32 %v2098_v53, %v1935_v0  ;;  %3060 = vmatprep.mubr.msk.bf16.mxu0 %vm95_vm0, %v2161_v46 }
 0x97e   :  { %v2140_v40 = vadd.f32 %v4518_v22, %v2116_v55  ;;  %3061 = vmatmul.mubr.msk.bf16.gmra.mrb[80].mxu0 %vm95_vm0, %v2162_v12  ;;  %v2155_v17 = vmax.f32 %v2139_v54, 0.0 }
 0x97f   :  { %v2138_v21 = vadd.f32 %v4518_v22, %v2114_v9  ;;  %v2153_v56 = vmax.f32 %v2137_v47, 0.0 }
 0x980   :  { %v2156_v51 = vmax.f32 %v2140_v40, 0.0 }
 0x981   :  { %v2154_v4 = vmax.f32 %v2138_v21, 0.0 }
 0x982   :  { %v2164_v61 = vpack.c.bf16 %v2156_v51, %v2155_v17 }
 0x983   :  { %v2163_v11 = vpack.c.bf16 %v2154_v4, %v2153_v56 }
 0x985   :  { %3064 = vmatprep.mubr.msk.bf16.mxu0 %vm95_vm0, %v2163_v11 }
 0x986   :  { %3065 = vmatmul.mubr.msk.bf16.gmra.mrb[84].mxu0 %vm95_vm0, %v2164_v61 }
 0xa3f   :  { %v3054_v43 = vpop.f32.mrb[72].mxu0 }
 0xa40   :  { %v4588_v63 = vadd.f32 %v3054_v43, %v2655_v35  ;;  %v2248_v26 = vpop.f32.mrb[73].mxu0 }
 0xa41   :  { %v4590_v22 = vadd.f32 %v2655_v35, %v2248_v26  ;;  %v3055_v6 = vpop.f32.mrb[74].mxu0 }
 0xa42   :  { %v4592_v37 = vadd.f32 %v3055_v6, %v2655_v35  ;;  %v2251_v29 = vpop.f32.mrb[75].mxu0  ;;  %v2318_v25 = vsel %vm2311_vm1, %v4588_v63, -inf }
 0xa43   :  { %v4596_v57 = vadd.f32 %v2655_v35, %v2251_v29  ;;  %2319 = vmax.xlane.f32.xlu1 %v2318_v25  ;;  %v2312_v33 = vsel %vm2311_vm1, %v4590_v22, -inf }
 0xa44   :  { %2313 = vmax.xlane.f32.xlu0 %v2312_v33  ;;  %v2321_v7 = vsel %vm2311_vm1, %v4592_v37, -inf }
 0xa45   :  { %v2315_v19 = vsel %vm2311_vm1, %v4596_v57, -inf }
 0xa47   :  { %2322 = vmax.xlane.f32.xlu1 %v2321_v7 }
 0xa48   :  { %2316 = vmax.xlane.f32.xlu0 %v2315_v19 }
 0xa49   :  { %v3058_v10 = vpop.f32.mrb[76].mxu0 }
 0xa4a   :  { %v4604_v1 = vadd.f32 %v3058_v10, %v2655_v35  ;;  %v2264_v50 = vpop.f32.mrb[77].mxu0 }
 0xa4b   :  { %v3059_v60 = vpop.f32.mrb[78].mxu0  ;;  %v4610_v58 = vadd.f32 %v2655_v35, %v2264_v50 }
 0xa4c   :  { %v4606_v30 = vadd.f32 %v3059_v60, %v2655_v35  ;;  %v2267_v44 = vpop.f32.mrb[79].mxu0  ;;  %v2330_v16 = vsel %vm2311_vm1, %v4604_v1, -inf }
 0xa4d   :  { %v4612_v3 = vadd.f32 %v2655_v35, %v2267_v44  ;;  %2331 = vmax.xlane.f32.xlu0 %v2330_v16  ;;  %v2324_v5 = vsel %vm2311_vm1, %v4610_v58, -inf }
 0xa4e   :  { %v2333_v20 = vsel %vm2311_vm1, %v4606_v30, -inf }
 0xa4f   :  { %2334 = vmax.xlane.f32.xlu1 %v2333_v20  ;;  %v2327_v8 = vsel %vm2311_vm1, %v4612_v3, -inf }
 0xa51   :  { %v3062_v48 = vpop.f32.mrb[80].mxu0  ;;  %2325 = vmax.xlane.f32.xlu0 %v2324_v5 }
 0xa52   :  { %v4618_v2 = vadd.f32 %v3062_v48, %v2655_v35  ;;  %v2280_v36 = vpop.f32.mrb[81].mxu0 }
 0xa53   :  { %v3063_v39 = vpop.f32.mrb[82].mxu0  ;;  %2328 = vmax.xlane.f32.xlu1 %v2327_v8  ;;  %v4626_v18 = vadd.f32 %v2655_v35, %v2280_v36 }
 0xa54   :  { %v4622_v59 = vadd.f32 %v3063_v39, %v2655_v35  ;;  %v2283_v23 = vpop.f32.mrb[83].mxu0  ;;  %v2342_v52 = vsel %vm2311_vm1, %v4618_v2, -inf }
 0xa55   :  { %v4628_v15 = vadd.f32 %v2655_v35, %v2283_v23  ;;  %2343 = vmax.xlane.f32.xlu0 %v2342_v52  ;;  %v2336_v34 = vsel %vm2311_vm1, %v4626_v18, -inf }
 0xa56   :  { %v2345_v38 = vsel %vm2311_vm1, %v4622_v59, -inf }
 0xa57   :  { %2346 = vmax.xlane.f32.xlu1 %v2345_v38  ;;  %v2339_v13 = vsel %vm2311_vm1, %v4628_v15, -inf }
 0xa59   :  { %v3066_v31 = vpop.f32.mrb[84].mxu0  ;;  %2337 = vmax.xlane.f32.xlu0 %v2336_v34 }
 0xa5a   :  { %v2296_v49 = vpop.f32.mrb[85].mxu0  ;;  %v4638_v32 = vadd.f32 %v3066_v31, %v2655_v35 }
 0xa5b   :  { %v4636_v41 = vadd.f32 %v2655_v35, %v2296_v49  ;;  %v3067_v45 = vpop.f32.mrb[86].mxu0  ;;  %2340 = vmax.xlane.f32.xlu1 %v2339_v13 }
 0xa5c   :  { %v2299_v14 = vpop.f32.mrb[87].mxu0  ;;  %v4644_v42 = vadd.f32 %v3067_v45, %v2655_v35  ;;  %v2354_v24 = vsel %vm2311_vm1, %v4638_v32, -inf }
 0xa5d   :  { %v4640_v12 = vadd.f32 %v2655_v35, %v2299_v14  ;;  %v2348_v28 = vsel %vm2311_vm1, %v4636_v41, -inf }
 0xa5e   :  { %2349 = vmax.xlane.f32.xlu0 %v2348_v28  ;;  %v2357_v46 = vsel %vm2311_vm1, %v4644_v42, -inf }
 0xa5f   :  { %v2351_v27 = vsel %vm2311_vm1, %v4640_v12, -inf }
 0xa60   :  { %2352 = vmax.xlane.f32.xlu1 %v2351_v27 }
 0xa62   :  { %2355 = vmax.xlane.f32.xlu0 %v2354_v24 }
 0xa64   :  { %2358 = vmax.xlane.f32.xlu1 %v2357_v46 }
 0xad0   :  { %v4652_v62 = vpop.xlane.xlu1 %2319 }
 0xad1   :  { %v2362_v0 = vsub.f32 %v4588_v63, %v4652_v62  ;;  %v4656_v53 = vpop.xlane.xlu0 %2313 }
 0xad2   :  { %v2360_v54 = vsub.f32 %v4590_v22, %v4656_v53 }
 0xad3   :  { %v2380_v55 = vmul.f32 1.442695, %v2362_v0 }
 0xad4   :  { %v2376_v47 = vmul.f32 1.442695, %v2360_v54  ;;  %v4660_v9 = vpop.xlane.xlu1 %2322 }
 0xad5   :  { %3110 = vpow2.f32 %v2380_v55  ;;  %v2363_v40 = vsub.f32 %v4592_v37, %v4660_v9  ;;  %v4664_v21 = vpop.xlane.xlu0 %2316 }
 0xad6   :  { %v2361_v17 = vsub.f32 %v4596_v57, %v4664_v21  ;;  %3112 = vpow2.f32 %v2376_v47 }
 0xad7   :  { %v2382_v51 = vmul.f32 1.442695, %v2363_v40 }
 0xad8   :  { %v2378_v56 = vmul.f32 1.442695, %v2361_v17 }
 0xad9   :  { %3114 = vpow2.f32 %v2382_v51 }
 0xada   :  { %v4668_v4 = vpop.xlane.xlu0 %2331  ;;  %3116 = vpow2.f32 %v2378_v56 }
 0xadb   :  { %v2366_v61 = vsub.f32 %v4604_v1, %v4668_v4 }
 0xadc   :  { %v4672_v11 = vpop.xlane.xlu1 %2334 }
 0xadd   :  { %v2367_v35 = vsub.f32 %v4606_v30, %v4672_v11  ;;  %v2388_v43 = vmul.f32 1.442695, %v2366_v61 }
 0xade   :  { %v4676_v6 = vpop.xlane.xlu0 %2325 }
 0xadf   :  { %v2390_v26 = vmul.f32 1.442695, %v2367_v35  ;;  %3118 = vpow2.f32 %v2388_v43  ;;  %v2364_v29 = vsub.f32 %v4610_v58, %v4676_v6  ;;  %v3111_v33 = vpop.eup %3110 }
 0xae0   :  { %v4680_v25 = vpop.xlane.xlu1 %2328  ;;  %v2414_v19 = vsel %vm2311_vm1, %v3111_v33, 0.0  ;;  %v3113_v50 = vpop.eup %3112 }
 0xae1   :  { %3120 = vpow2.f32 %v2390_v26  ;;  %v2365_v7 = vsub.f32 %v4612_v3, %v4680_v25  ;;  %v2384_v10 = vmul.f32 1.442695, %v2364_v29  ;;  %2415 = vadd.xlane.f32.xlu0 %v2414_v19  ;;  %v2408_v39 = vsel %vm2311_vm1, %v3113_v50, 0.0 }
 0xae2   :  { %v4685_v44 = vpop.xlane.xlu0 %2343 }
 0xae3   :  { %v2386_v60 = vmul.f32 1.442695, %v2365_v7  ;;  %3122 = vpow2.f32 %v2384_v10  ;;  %v2370_v16 = vsub.f32 %v4618_v2, %v4685_v44  ;;  %v3115_v48 = vpop.eup %3114 }
 0xae4   :  { %v4689_v20 = vpop.xlane.xlu1 %2346  ;;  %v2417_v8 = vsel %vm2311_vm1, %v3115_v48, 0.0  ;;  %v3117_v23 = vpop.eup %3116 }
 0xae5   :  { %3124 = vpow2.f32 %v2386_v60  ;;  %v2371_v5 = vsub.f32 %v4622_v59, %v4689_v20  ;;  %v2396_v36 = vmul.f32 1.442695, %v2370_v16  ;;  %2418 = vadd.xlane.f32.xlu1 %v2417_v8  ;;  %2409 = vadd.xlane.f32.xlu0 %v2408_v39  ;;  %v2411_v14 = vsel %vm2311_vm1, %v3117_v23, 0.0 }
 0xae6   :  { %v4695_v38 = vpop.xlane.xlu0 %2337 }
 0xae7   :  { %v2398_v52 = vmul.f32 1.442695, %v2371_v5  ;;  %3126 = vpow2.f32 %v2396_v36  ;;  %v2368_v31 = vsub.f32 %v4626_v18, %v4695_v38 }
 0xae8   :  { %v4699_v34 = vpop.xlane.xlu1 %2340 }
 0xae9   :  { %3128 = vpow2.f32 %v2398_v52  ;;  %v2369_v49 = vsub.f32 %v4628_v15, %v4699_v34  ;;  %v3119_v13 = vpop.eup %3118  ;;  %v2392_v45 = vmul.f32 1.442695, %v2368_v31  ;;  %2412 = vadd.xlane.f32.xlu1 %v2411_v14 }
 0xaea   :  { %v2426_v46 = vsel %vm2311_vm1, %v3119_v13, 0.0 }
 0xaeb   :  { %v3121_v28 = vpop.eup %3120  ;;  %v2394_v27 = vmul.f32 1.442695, %v2369_v49  ;;  %v4704_v24 = vpop.xlane.xlu0 %2349  ;;  %3130 = vpow2.f32 %v2392_v45  ;;  %2427 = vadd.xlane.f32.xlu0 %v2426_v46 }
 0xaec   :  { %v2372_v0 = vsub.f32 %v4636_v41, %v4704_v24  ;;  %v2429_v17 = vsel %vm2311_vm1, %v3121_v28, 0.0 }
 0xaed   :  { %3132 = vpow2.f32 %v2394_v27  ;;  %v4709_v54 = vpop.xlane.xlu1 %2352  ;;  %v3123_v55 = vpop.eup %3122  ;;  %2430 = vadd.xlane.f32.xlu1 %v2429_v17 }
 0xaee   :  { %v2400_v47 = vmul.f32 1.442695, %v2372_v0  ;;  %v2373_v40 = vsub.f32 %v4640_v12, %v4709_v54  ;;  %v2420_v61 = vsel %vm2311_vm1, %v3123_v55, 0.0 }
 0xaef   :  { %v3125_v51 = vpop.eup %3124  ;;  %v4714_v56 = vpop.xlane.xlu0 %2355  ;;  %2421 = vadd.xlane.f32.xlu0 %v2420_v61 }
 0xaf0   :  { %3134 = vpow2.f32 %v2400_v47  ;;  %v2402_v35 = vmul.f32 1.442695, %v2373_v40  ;;  %v2374_v43 = vsub.f32 %v4638_v32, %v4714_v56  ;;  %v2423_v10 = vsel %vm2311_vm1, %v3125_v51, 0.0 }
 0xaf1   :  { %v4719_v26 = vpop.xlane.xlu1 %2358  ;;  %v3127_v29 = vpop.eup %3126  ;;  %2424 = vadd.xlane.f32.xlu1 %v2423_v10 }
 0xaf2   :  { %3136 = vpow2.f32 %v2402_v35  ;;  %v2404_v33 = vmul.f32 1.442695, %v2374_v43  ;;  %v2375_v7 = vsub.f32 %v4644_v42, %v4719_v26  ;;  %v2438_v50 = vsel %vm2311_vm1, %v3127_v29, 0.0 }
 0xaf3   :  { %v3129_v19 = vpop.eup %3128  ;;  %2439 = vadd.xlane.f32.xlu0 %v2438_v50 }
 0xaf4   :  { %3138 = vpow2.f32 %v2404_v33  ;;  %v2406_v60 = vmul.f32 1.442695, %v2375_v7  ;;  %v2441_v48 = vsel %vm2311_vm1, %v3129_v19, 0.0 }
 0xaf5   :  { %v3131_v16 = vpop.eup %3130  ;;  %2442 = vadd.xlane.f32.xlu1 %v2441_v48 }
 0xaf6   :  { %3140 = vpow2.f32 %v2406_v60  ;;  %v2432_v36 = vsel %vm2311_vm1, %v3131_v16, 0.0 }
 0xaf7   :  { %v3133_v5 = vpop.eup %3132  ;;  %2433 = vadd.xlane.f32.xlu0 %v2432_v36 }
 0xaf8   :  { %v2435_v39 = vsel %vm2311_vm1, %v3133_v5, 0.0 }
 0xaf9   :  { %2436 = vadd.xlane.f32.xlu1 %v2435_v39 }
 0xafa   :  { %v3135_v8 = vpop.eup %3134 }
 0xafb   :  { %v2444_v23 = vsel %vm2311_vm1, %v3135_v8, 0.0 }
 0xafc   :  { %v3137_v52 = vpop.eup %3136  ;;  %2445 = vadd.xlane.f32.xlu0 %v2444_v23 }
 0xafd   :  { %v2447_v31 = vsel %vm2311_vm1, %v3137_v52, 0.0 }
 0xafe   :  { %v3139_v49 = vpop.eup %3138  ;;  %2448 = vadd.xlane.f32.xlu1 %v2447_v31 }
 0xaff   :  { %v2450_v13 = vsel %vm2311_vm1, %v3139_v49, 0.0 }
 0xb00   :  { %v3141_v45 = vpop.eup %3140  ;;  %2451 = vadd.xlane.f32.xlu0 %v2450_v13 }
 0xb01   :  { %v2453_v14 = vsel %vm2311_vm1, %v3141_v45, 0.0 }
 0xb02   :  { %2454 = vadd.xlane.f32.xlu1 %v2453_v14 }
 0xb6e   :  { %v2416_v28 = vpop.xlane.xlu0 %2415 }
 0xb6f   :  { %3142 = vlog2.f32 %v2416_v28 }
 0xb72   :  { %v2419_v27 = vpop.xlane.xlu1 %2418  ;;  %v2410_v46 = vpop.xlane.xlu0 %2409 }
 0xb73   :  { %3144 = vlog2.f32 %v2419_v27 }
 0xb74   :  { %3146 = vlog2.f32 %v2410_v46 }
 0xb76   :  { %v2413_v0 = vpop.xlane.xlu1 %2412 }
 0xb77   :  { %3148 = vlog2.f32 %v2413_v0 }
 0xb78   :  { %v2428_v55 = vpop.xlane.xlu0 %2427 }
 0xb79   :  { %3150 = vlog2.f32 %v2428_v55  ;;  %v3143_v47 = vpop.eup %3142 }
 0xb7a   :  { %v2461_v40 = vmul.f32 0.6931472, %v3143_v47  ;;  %v2431_v17 = vpop.xlane.xlu1 %2430 }
 0xb7b   :  { %3152 = vlog2.f32 %v2431_v17 }
 0xb7c   :  { %v2422_v51 = vpop.xlane.xlu0 %2421  ;;  %v2490_v61 = vadd.f32 %v2461_v40, %v4652_v62 }
 0xb7d   :  { %3154 = vlog2.f32 %v2422_v51  ;;  %v3145_v35 = vpop.eup %3144 }
 0xb7e   :  { %v3147_v43 = vpop.eup %3146  ;;  %v2506_v29 = vsub.f32 %v4588_v63, %v2490_v61  ;;  %v2463_v33 = vmul.f32 0.6931472, %v3145_v35  ;;  %v2425_v7 = vpop.xlane.xlu1 %2424 }
 0xb7f   :  { %v2457_v10 = vmul.f32 0.6931472, %v3147_v43  ;;  %3156 = vlog2.f32 %v2425_v7 }
 0xb80   :  { %v2440_v19 = vpop.xlane.xlu0 %2439  ;;  %2522 = vst.msk [vmem:[%s4833_s5 + $0x10] sm:$0xff] %vm2311_vm1, %v2506_v29  ;;  %v2491_v50 = vadd.f32 %v2463_v33, %v4660_v9 }
 0xb81   :  { %3158 = vlog2.f32 %v2440_v19  ;;  %v3149_v60 = vpop.eup %3148  ;;  %v2488_v62 = vadd.f32 %v2457_v10, %v4656_v53 }
 0xb82   :  { %v2507_v48 = vsub.f32 %v4592_v37, %v2491_v50  ;;  %v2459_v63 = vmul.f32 0.6931472, %v3149_v60  ;;  %v2443_v5 = vpop.xlane.xlu1 %2442 }
 0xb83   :  { %v3151_v16 = vpop.eup %3150  ;;  %v2504_v36 = vsub.f32 %v4590_v22, %v2488_v62  ;;  %3160 = vlog2.f32 %v2443_v5 }
 0xb84   :  { %v2469_v8 = vmul.f32 0.6931472, %v3151_v16  ;;  %v2434_v39 = vpop.xlane.xlu0 %2433  ;;  %2523 = vst.msk [vmem:[%s4833_s5 + $0x18] sm:$0xff] %vm2311_vm1, %v2507_v48  ;;  %v2489_v9 = vadd.f32 %v2459_v63, %v4664_v21 }
 0xb85   :  { %3162 = vlog2.f32 %v2434_v39  ;;  %v3153_v23 = vpop.eup %3152  ;;  %2520 = vst.msk [vmem:[%s4833_s5] sm:$0xff] %vm2311_vm1, %v2504_v36 }
 0xb86   :  { %v2494_v37 = vadd.f32 %v2469_v8, %v4668_v4  ;;  %v2505_v53 = vsub.f32 %v4596_v57, %v2489_v9  ;;  %v2471_v52 = vmul.f32 0.6931472, %v3153_v23  ;;  %v2437_v31 = vpop.xlane.xlu1 %2436 }
 0xb87   :  { %v3155_v22 = vpop.eup %3154  ;;  %3164 = vlog2.f32 %v2437_v31 }
 0xb88   :  { %v2510_v49 = vsub.f32 %v4604_v1, %v2494_v37  ;;  %v2465_v13 = vmul.f32 0.6931472, %v3155_v22  ;;  %2521 = vst.msk [vmem:[%s4833_s5 + $0x8] sm:$0xff] %vm2311_vm1, %v2505_v53  ;;  %v2495_v21 = vadd.f32 %v2471_v52, %v4672_v11 }
 0xb89   :  { %v2446_v45 = vpop.xlane.xlu0 %2445  ;;  %v3157_v14 = vpop.eup %3156 }
 0xb8a   :  { %3166 = vlog2.f32 %v2446_v45  ;;  %2526 = vst.msk [vmem:[%s4833_s5 + $0x30] sm:$0xff] %vm2311_vm1, %v2510_v49  ;;  %v2492_v57 = vadd.f32 %v2465_v13, %v4676_v6  ;;  %v2511_v4 = vsub.f32 %v4606_v30, %v2495_v21  ;;  %v2467_v28 = vmul.f32 0.6931472, %v3157_v14 }
 0xb8b   :  { %v3159_v1 = vpop.eup %3158  ;;  %v2449_v27 = vpop.xlane.xlu1 %2448 }
 0xb8c   :  { %v2508_v46 = vsub.f32 %v4610_v58, %v2492_v57  ;;  %v2477_v0 = vmul.f32 0.6931472, %v3159_v1  ;;  %3168 = vlog2.f32 %v2449_v27  ;;  %2527 = vst.msk [vmem:[%s4833_s5 + $0x38] sm:$0xff] %vm2311_vm1, %v2511_v4  ;;  %v2493_v11 = vadd.f32 %v2467_v28, %v4680_v25 }
 0xb8d   :  { %v2452_v55 = vpop.xlane.xlu0 %2451  ;;  %v3161_v47 = vpop.eup %3160 }
 0xb8e   :  { %3170 = vlog2.f32 %v2452_v55  ;;  %2524 = vst.msk [vmem:[%s4833_s5 + $0x20] sm:$0xff] %vm2311_vm1, %v2508_v46  ;;  %v2498_v30 = vadd.f32 %v2477_v0, %v4685_v44  ;;  %v2509_v6 = vsub.f32 %v4612_v3, %v2493_v11  ;;  %v2479_v40 = vmul.f32 0.6931472, %v3161_v47 }
 0xb8f   :  { %v3163_v58 = vpop.eup %3162  ;;  %v2455_v17 = vpop.xlane.xlu1 %2454 }
 0xb90   :  { %v2514_v51 = vsub.f32 %v4618_v2, %v2498_v30  ;;  %v2473_v61 = vmul.f32 0.6931472, %v3163_v58  ;;  %3172 = vlog2.f32 %v2455_v17  ;;  %2525 = vst.msk [vmem:[%s4833_s5 + $0x28] sm:$0xff] %vm2311_vm1, %v2509_v6  ;;  %v2499_v25 = vadd.f32 %v2479_v40, %v4689_v20 }
 0xb91   :  { %v3165_v35 = vpop.eup %3164 }
 0xb92   :  { %2530 = vst.msk [vmem:[%s4833_s5 + $0x50] sm:$0xff] %vm2311_vm1, %v2514_v51  ;;  %v2496_v3 = vadd.f32 %v2473_v61, %v4695_v38  ;;  %v2515_v2 = vsub.f32 %v4622_v59, %v2499_v25  ;;  %v2475_v43 = vmul.f32 0.6931472, %v3165_v35 }
 0xb94   :  { %v3167_v44 = vpop.eup %3166  ;;  %v2512_v29 = vsub.f32 %v4626_v18, %v2496_v3  ;;  %2531 = vst.msk [vmem:[%s4833_s5 + $0x58] sm:$0xff] %vm2311_vm1, %v2515_v2  ;;  %v2497_v20 = vadd.f32 %v2475_v43, %v4699_v34 }
 0xb95   :  { %v2481_v33 = vmul.f32 0.6931472, %v3167_v44 }
 0xb96   :  { %v3169_v7 = vpop.eup %3168  ;;  %2528 = vst.msk [vmem:[%s4833_s5 + $0x40] sm:$0xff] %vm2311_vm1, %v2512_v29  ;;  %v2513_v10 = vsub.f32 %v4628_v15, %v2497_v20 }
 0xb97   :  { %v2500_v38 = vadd.f32 %v2481_v33, %v4704_v24  ;;  %v2483_v18 = vmul.f32 0.6931472, %v3169_v7 }
 0xb98   :  { %v3171_v59 = vpop.eup %3170  ;;  %2529 = vst.msk [vmem:[%s4833_s5 + $0x48] sm:$0xff] %vm2311_vm1, %v2513_v10 }
 0xb99   :  { %v2516_v19 = vsub.f32 %v4636_v41, %v2500_v38  ;;  %v2485_v50 = vmul.f32 0.6931472, %v3171_v59  ;;  %v2501_v34 = vadd.f32 %v2483_v18, %v4709_v54 }
 0xb9a   :  { %v3173_v60 = vpop.eup %3172 }
 0xb9b   :  { %2532 = vst.msk [vmem:[%s4833_s5 + $0x60] sm:$0xff] %vm2311_vm1, %v2516_v19  ;;  %v2502_v24 = vadd.f32 %v2485_v50, %v4714_v56  ;;  %v2517_v15 = vsub.f32 %v4640_v12, %v2501_v34  ;;  %v2487_v62 = vmul.f32 0.6931472, %v3173_v60 }
 0xb9d   :  { %v2518_v41 = vsub.f32 %v4638_v32, %v2502_v24  ;;  %2533 = vst.msk [vmem:[%s4833_s5 + $0x68] sm:$0xff] %vm2311_vm1, %v2517_v15  ;;  %v2503_v54 = vadd.f32 %v2487_v62, %v4719_v26 }
 0xb9f   :  { %2534 = vst.msk [vmem:[%s4833_s5 + $0x70] sm:$0xff] %vm2311_vm1, %v2518_v41  ;;  %v2519_v16 = vsub.f32 %v4644_v42, %v2503_v54 }
 0xba1   :  { %2535 = vst.msk [vmem:[%s4833_s5 + $0x78] sm:$0xff] %vm2311_vm1, %v2519_v16 }
 0xba2   :  { %2540 = vsyncpa [#allocation3], 1 }
 0xba3   :  { %2541 = vsyncpa [#allocation4], 1 }

</bundles_post_ra>
